<compile_context>
chip_gen: v7x
topology: tpu7x:2x2x1
jax: 0.10.0
libtpu: 0.0.40
codegen_flags: <defaults>
</compile_context>

<pallas_src>
import math

import jax
import jax.numpy as jnp
from jax.experimental import pallas as pl
from jax.experimental.pallas import tpu as pltpu

# ---------------- config (small synthetic sizes) ----------------
D_MODEL = 32
D_K = 8
D_V = 8
H = 4
D_FF = 64
N_LAYERS = 2
PADDING_IDX = 0
LN_EPS = 1e-5

# Packed per-layer FFN / bias / LayerNorm slab: (WFF_ROWS, D_FF) f32 per layer.
ROW_W1 = 0                    # rows [0, 32)  : w1  (D_MODEL, D_FF)
ROW_W2 = D_MODEL              # rows [32, 96) : w2  (D_FF, D_MODEL) in cols [0, 32)
ROW_B1 = D_MODEL + D_FF       # 96 : fc1 bias  (D_FF,)
ROW_BO = ROW_B1 + 1           # 97 : Wo bias   (D_MODEL,)
ROW_G1 = ROW_B1 + 2           # 98 : LN1 gamma
ROW_BE1 = ROW_B1 + 3          # 99 : LN1 beta
ROW_B2 = ROW_B1 + 4           # 100: fc2 bias
ROW_G2 = ROW_B1 + 5           # 101: LN2 gamma
ROW_BE2 = ROW_B1 + 6          # 102: LN2 beta
WFF_ROWS = 104                # padded to a multiple of 8 sublanes


# ---------------- geometry (plain JAX, batch-independent, f32) ----------------
def box_relational_log_weights(n, wg_w, wg_b, dim_g=64, wave_len=1000.0):
    """log(clamp(relu(WG(BoxRelationalEmbedding)), 1e-6)) as (H, n, n), f32."""
    g = int(round(math.sqrt(n)))
    assert g * g == n, "sequence length must be a square grid"
    xs = jnp.arange(g, dtype=jnp.float32)
    x_min = jnp.repeat(xs, g)
    y_min = jnp.tile(xs, g)
    x_max = x_min + 1.0
    y_max = y_min + 1.0
    cx = (x_min + x_max) * 0.5
    cy = (y_min + y_max) * 0.5
    w = (x_max - x_min) + 1.0
    h = (y_max - y_min) + 1.0
    dx = jnp.log(jnp.maximum(jnp.abs((cx[:, None] - cx[None, :]) / w[:, None]), 1e-3))
    dy = jnp.log(jnp.maximum(jnp.abs((cy[:, None] - cy[None, :]) / h[:, None]), 1e-3))
    dw = jnp.log(w[:, None] / w[None, :])
    dh = jnp.log(h[:, None] / h[None, :])
    position_mat = jnp.stack([dx, dy, dw, dh], axis=-1)               # (n, n, 4)
    feat_range = jnp.arange(dim_g // 8, dtype=jnp.float32)
    dim_mat = 1.0 / jnp.power(wave_len, feat_range / (dim_g / 8.0))   # (8,)
    mul = (position_mat[..., None] * 100.0) * dim_mat                 # (n, n, 4, 8)
    mul = mul.reshape(n, n, dim_g // 2)
    emb = jnp.concatenate([jnp.sin(mul), jnp.cos(mul)], axis=-1)      # (n, n, 64)
    y = emb.reshape(n * n, dim_g) @ wg_w + wg_b                       # (n*n, H)
    # relu -> clamp(1e-6) -> log  ==  log(max(., 1e-6)); kept in f32 (review).
    return jnp.log(jnp.maximum(y, 1e-6)).reshape(n, n, H).transpose(2, 0, 1)


# ---------------- Pallas kernel: fused encoder stack, one batch element / step -------
def _encoder_kernel(x_ref, pos_ref, logw_ref, wqkv_ref, wo_ref, wff_ref, out_ref):
    x = x_ref[...]                       # (N, D) f32 — this grid step's batch element
    pos = pos_ref[...]                   # (N, D) f32
    n, d = x.shape

    # Padding mask computed in-kernel from x (torch: sum(grids,-1) == padding_idx).
    row_sum = jnp.sum(x, axis=-1)                                     # (N,)
    key_bias = jnp.where(row_sum == float(PADDING_IDX), -1e30, 0.0)   # finite mask

    # Combined additive attention bias, built once and reused by all layers:
    # per-head geometry log-weights + padded-key bias.
    bias = logw_ref[...] + key_bias[None, None, :]                    # (H, N, N)

    ones_col = jnp.ones((n, 1), jnp.float32)                          # folds QKV biases

    def layer_norm(v, g, beta):
        mu = jnp.mean(v, axis=-1, keepdims=True)
        var = jnp.mean(jnp.square(v - mu), axis=-1, keepdims=True)
        return (v - mu) * jax.lax.rsqrt(var + LN_EPS) * g + beta

    out = x
    for l in range(N_LAYERS):            # static unroll; everything stays in VMEM
        # per-layer packed small params
        wffl = wff_ref[l]                                   # (WFF_ROWS, D_FF)
        w1 = wffl[ROW_W1:ROW_W1 + D_MODEL, :]               # (D, D_FF)
        w2 = wffl[ROW_W2:ROW_W2 + D_FF, 0:D_MODEL]          # (D_FF, D)
        b1 = wffl[ROW_B1:ROW_B1 + 1, :]                     # (1, D_FF)
        bo = wffl[ROW_BO:ROW_BO + 1, 0:D_MODEL]             # (1, D)
        g1 = wffl[ROW_G1:ROW_G1 + 1, 0:D_MODEL]
        be1 = wffl[ROW_BE1:ROW_BE1 + 1, 0:D_MODEL]
        b2 = wffl[ROW_B2:ROW_B2 + 1, 0:D_MODEL]
        g2 = wffl[ROW_G2:ROW_G2 + 1, 0:D_MODEL]
        be2 = wffl[ROW_BE2:ROW_BE2 + 1, 0:D_MODEL]

        # TODO(synk): the reference MultiHeadAttention source is not provided; per
        # the grid-augmented convention, pos is added to q/k inside MHA and to v by
        # EncoderLayer, so q = k = v = (out + pos) pre-projection here, while the
        # residual uses the raw layer input `out`.
        xp = out + pos                                      # (N, D)
        xpa = jnp.concatenate([xp, ones_col], axis=-1)      # (N, D+1): bias column
        xb = jnp.broadcast_to(xpa[None, :, :], (H, n, d + 1))   # (H, N, D+1)

        # H-batched projections (weights pre-laid-out as (H, Dk, D+1) wrapper-side,
        # QKV bias folded into the last input column, 1/sqrt(Dk) folded into Wq).
        q = jnp.einsum('hnd,hcd->hnc', xb, wqkv_ref[3 * l + 0],
                       preferred_element_type=jnp.float32)           # (H, N, Dk)
        k = jnp.einsum('hnd,hcd->hnc', xb, wqkv_ref[3 * l + 1],
                       preferred_element_type=jnp.float32)           # (H, N, Dk)
        v = jnp.einsum('hnd,hcd->hnc', xb, wqkv_ref[3 * l + 2],
                       preferred_element_type=jnp.float32)           # (H, N, Dv)

        att = jnp.einsum('hqd,hkd->hqk', q, k,
                         preferred_element_type=jnp.float32) + bias  # (H, N, N)
        m = jnp.max(att, axis=-1, keepdims=True)
        e = jnp.exp(att - m)
        p = e * pl.reciprocal(jnp.sum(e, axis=-1, keepdims=True), approx=True)
        o = jnp.einsum('hqk,hkd->hqd', p, v,
                       preferred_element_type=jnp.float32)           # (H, N, Dv)

        # Output projection: per-head matmul + reduction over heads
        # (== concat(heads) @ Wo) — avoids an in-kernel transpose/reshape/concat.
        att_parts = jnp.einsum('hnd,hdo->hno', o, wo_ref[l],
                               preferred_element_type=jnp.float32)   # (H, N, D)
        att_out = jnp.sum(att_parts, axis=0) + bo                    # (N, D)

        # residual + LayerNorm (dropout == identity in eval mode)
        y = layer_norm(out + att_out, g1, be1)

        # PositionWiseFeedForward: layer_norm(y + fc2(relu(fc1(y))))
        ffh = jnp.maximum(jnp.dot(y, w1, preferred_element_type=jnp.float32) + b1, 0.0)
        ff = jnp.dot(ffh, w2, preferred_element_type=jnp.float32) + b2
        out = layer_norm(y + ff, g2, be2)

    out_ref[...] = out


def encoder_stack(x, pos, logw, params):
    b, n, d = x.shape
    # Flatten (B, N, D) -> (B*N, D) on the wrapper side (free XLA layout work);
    # the kernel sees one (N, D) batch element per grid step.
    x2 = x.reshape(b * n, d)
    pos2 = pos.reshape(b * n, d)
    wqkv3 = params["wqkv3"]              # (3*L, H, Dk, D+1) f32
    wo3 = params["wo3"]                  # (L, H, Dv, D)     f32
    wff = params["wff"]                  # (L, WFF_ROWS, D_FF) f32

    out2 = pl.pallas_call(
        _encoder_kernel,
        out_shape=jax.ShapeDtypeStruct((b * n, d), jnp.float32),
        grid=(b,),
        in_specs=[
            pl.BlockSpec((n, d), lambda i: (i, 0)),              # x   (per batch)
            pl.BlockSpec((n, d), lambda i: (i, 0)),              # pos (per batch)
            pl.BlockSpec(logw.shape, lambda i: (0, 0, 0)),       # geometry (resident)
            pl.BlockSpec(wqkv3.shape, lambda i: (0, 0, 0, 0)),   # QKV weights (resident)
            pl.BlockSpec(wo3.shape, lambda i: (0, 0, 0, 0)),     # Wo weights (resident)
            pl.BlockSpec(wff.shape, lambda i: (0, 0, 0)),        # packed FFN/bias/LN slab
        ],
        out_specs=pl.BlockSpec((n, d), lambda i: (i, 0)),
        compiler_params=pltpu.CompilerParams(
            # batch axis is independent -> both TensorCores on v7x; harmless on
            # single-TC v5e/v6e beyond one extra ~0.35us grid step.
            dimension_semantics=("parallel",),
            # tiny footprint at these shapes; raise further when B/N scale
            # (scoped defaults: 16 MiB v5e, 32 MiB v6e/v7x).
            vmem_limit_bytes=32 * 1024 * 1024,
        ),
    )(x2, pos2, logw, wqkv3, wo3, wff)
    return out2.reshape(b, n, d)


# ---------------- MultiLevelEncoder forward ----------------
@jax.jit
def multi_level_encoder(grids, pos, params):
    n = grids.shape[1]
    # attention_mask is part of the module's return contract; the kernel
    # re-derives the same mask in-VMEM from x (no mask input DMA).
    mask_bool = (jnp.sum(grids, axis=-1) == PADDING_IDX)        # (B, N)
    attention_mask = mask_bool[:, None, None, :]                # (B, 1, 1, N) bool
    logw = box_relational_log_weights(n, params["wg_w"], params["wg_b"])   # (H, N, N)
    out = encoder_stack(grids, pos, logw, params)
    return out, attention_mask


# ---------------- deterministic parameter init (kernel-ready layouts) ----------------
def init_params(key):
    ks = iter(jax.random.split(key, 64))

    def lin(n_in, n_out):
        w = jax.random.normal(next(ks), (n_in, n_out), jnp.float32) * (1.0 / math.sqrt(n_in))
        b = jax.random.normal(next(ks), (n_out,), jnp.float32) * 0.01
        return w, b

    def head_weights(w, bvec, dh, scale=1.0):
        # (D, H*dh), (H*dh,) -> (H, dh, D+1): head-major split + bias folding done
        # wrapper-side so the kernel never reshapes/transposes activations.
        w3 = (w * scale).reshape(D_MODEL, H, dh).transpose(1, 2, 0)   # (H, dh, D)
        b3 = (bvec * scale).reshape(H, dh, 1)
        return jnp.concatenate([w3, b3], axis=2)                      # (H, dh, D+1)

    wqkv_l, wo_l, wff_l = [], [], []
    for _ in range(N_LAYERS):
        wq, bq = lin(D_MODEL, H * D_K)
        wk, bk = lin(D_MODEL, H * D_K)
        wv, bv = lin(D_MODEL, H * D_V)
        wo, bo = lin(H * D_V, D_MODEL)
        w1, b1 = lin(D_MODEL, D_FF)
        w2, b2 = lin(D_FF, D_MODEL)
        g1 = jnp.ones((D_MODEL,), jnp.float32)
        be1 = jnp.zeros((D_MODEL,), jnp.float32)
        g2 = jnp.ones((D_MODEL,), jnp.float32)
        be2 = jnp.zeros((D_MODEL,), jnp.float32)

        wqkv_l += [head_weights(wq, bq, D_K, scale=1.0 / math.sqrt(D_K)),  # 1/sqrt(dk) folded
                   head_weights(wk, bk, D_K),
                   head_weights(wv, bv, D_V)]
        wo_l.append(wo.reshape(H, D_V, D_MODEL))

        slab = jnp.zeros((WFF_ROWS, D_FF), jnp.float32)
        slab = slab.at[ROW_W1:ROW_W1 + D_MODEL, :].set(w1)
        slab = slab.at[ROW_W2:ROW_W2 + D_FF, 0:D_MODEL].set(w2)
        slab = slab.at[ROW_B1, :].set(b1)
        slab = slab.at[ROW_BO, 0:D_MODEL].set(bo)
        slab = slab.at[ROW_G1, 0:D_MODEL].set(g1)
        slab = slab.at[ROW_BE1, 0:D_MODEL].set(be1)
        slab = slab.at[ROW_B2, 0:D_MODEL].set(b2)
        slab = slab.at[ROW_G2, 0:D_MODEL].set(g2)
        slab = slab.at[ROW_BE2, 0:D_MODEL].set(be2)
        wff_l.append(slab)

    wg_w = jax.random.normal(next(ks), (64, H), jnp.float32) * (1.0 / 8.0)
    wg_b = jax.random.normal(next(ks), (H,), jnp.float32) * 0.01
    return dict(wqkv3=jnp.stack(wqkv_l),     # (3*L, H, Dk, D+1)
                wo3=jnp.stack(wo_l),         # (L, H, Dv, D)
                wff=jnp.stack(wff_l),        # (L, WFF_ROWS, D_FF)
                wg_w=wg_w, wg_b=wg_b)


if __name__ == "__main__":
    key = jax.random.PRNGKey(0)
    k_p, k_g, k_pos = jax.random.split(key, 3)
    params = init_params(k_p)

    B, N = 2, 16  # N = 4x4 grid cells
    grids = jax.random.normal(k_g, (B, N, D_MODEL), jnp.float32)
    grids = grids.at[1, -1, :].set(0.0)  # one padded cell (sum == padding_idx) exercises the mask
    pos = jax.random.normal(k_pos, (B, N, D_MODEL), jnp.float32) * 0.1

    out, attn_mask = multi_level_encoder(grids, pos, params)
    jax.block_until_ready(out)
    jax.block_until_ready(attn_mask)

    assert out.shape == (B, N, D_MODEL) and out.dtype == jnp.float32
    assert attn_mask.shape == (B, 1, 1, N) and attn_mask.dtype == jnp.bool_
    assert bool(jnp.all(jnp.isfinite(out)))
    print("KERNEL_OK")
</pallas_src>

<mosaic_0001>
module attributes {stable_mosaic.version = 11 : i64} {
  func.func @_encoder_kernel(%arg0: i32, %arg1: memref<16x32xf32, #tpu.memory_space<vmem>>, %arg2: memref<16x32xf32, #tpu.memory_space<vmem>>, %arg3: memref<4x16x16xf32, #tpu.memory_space<vmem>>, %arg4: memref<6x4x8x33xf32, #tpu.memory_space<vmem>>, %arg5: memref<2x4x8x32xf32, #tpu.memory_space<vmem>>, %arg6: memref<2x104x64xf32, #tpu.memory_space<vmem>>, %arg7: memref<16x32xf32, #tpu.memory_space<vmem>>) attributes {dimension_semantics = [#tpu.dimension_semantics<parallel>], iteration_bounds = array<i64: 2>, scalar_prefetch = 0 : i64, scratch_operands = 0 : i64, tpu.core_type = #tpu.core_type<tc>, window_params = [{transform_indices = @transform_0, window_bounds = array<i64: 16, 32>}, {transform_indices = @transform_1, window_bounds = array<i64: 16, 32>}, {pipeline_mode = #tpu.pipeline_mode<synchronous>, transform_indices = @transform_2, window_bounds = array<i64: 4, 16, 16>}, {pipeline_mode = #tpu.pipeline_mode<synchronous>, transform_indices = @transform_3, window_bounds = array<i64: 6, 4, 8, 33>}, {pipeline_mode = #tpu.pipeline_mode<synchronous>, transform_indices = @transform_4, window_bounds = array<i64: 2, 4, 8, 32>}, {pipeline_mode = #tpu.pipeline_mode<synchronous>, transform_indices = @transform_5, window_bounds = array<i64: 2, 104, 64>}, {transform_indices = @transform_6, window_bounds = array<i64: 16, 32>}]} {
    %c0 = arith.constant 0 : index
    %c0_0 = arith.constant 0 : index
    %0 = vector.load %arg1[%c0, %c0_0] : memref<16x32xf32, #tpu.memory_space<vmem>>, vector<16x32xf32>
    %c0_1 = arith.constant 0 : index
    %c0_2 = arith.constant 0 : index
    %1 = vector.load %arg2[%c0_1, %c0_2] : memref<16x32xf32, #tpu.memory_space<vmem>>, vector<16x32xf32>
    %cst = arith.constant dense<0.000000e+00> : vector<16xf32>
    %2 = vector.multi_reduction <add>, %0, %cst [1] : vector<16x32xf32> to vector<16xf32>
    %cst_3 = arith.constant 0.000000e+00 : f32
    %3 = vector.broadcast %cst_3 : f32 to vector<16xf32>
    %4 = arith.cmpf oeq, %2, %3 : vector<16xf32>
    %cst_4 = arith.constant -1.000000e+30 : f32
    %cst_5 = arith.constant 0.000000e+00 : f32
    %5 = vector.broadcast %cst_4 : f32 to vector<16xf32>
    %6 = vector.broadcast %cst_5 : f32 to vector<16xf32>
    %7 = arith.select %4, %5, %6 : vector<16xi1>, vector<16xf32>
    %c0_6 = arith.constant 0 : index
    %c0_7 = arith.constant 0 : index
    %c0_8 = arith.constant 0 : index
    %8 = vector.load %arg3[%c0_6, %c0_7, %c0_8] : memref<4x16x16xf32, #tpu.memory_space<vmem>>, vector<4x16x16xf32>
    %9 = vector.shape_cast %7 : vector<16xf32> to vector<1x1x16xf32>
    %10 = vector.broadcast %9 : vector<1x1x16xf32> to vector<4x16x16xf32>
    %11 = arith.addf %8, %10 : vector<4x16x16xf32>
    %cst_9 = arith.constant 1.000000e+00 : f32
    %12 = vector.broadcast %cst_9 : f32 to vector<16x1xf32>
    %c0_10 = arith.constant 0 : index
    %c0_11 = arith.constant 0 : index
    %c0_12 = arith.constant 0 : index
    %13 = vector.load %arg6[%c0_10, %c0_11, %c0_12] : memref<2x104x64xf32, #tpu.memory_space<vmem>>, vector<1x104x64xf32>
    %14 = vector.shape_cast %13 : vector<1x104x64xf32> to vector<104x64xf32>
    %15 = vector.extract_strided_slice %14 {offsets = [0, 0], sizes = [32, 64], strides = [1, 1]} : vector<104x64xf32> to vector<32x64xf32>
    %16 = vector.extract_strided_slice %14 {offsets = [32, 0], sizes = [64, 32], strides = [1, 1]} : vector<104x64xf32> to vector<64x32xf32>
    %17 = vector.extract_strided_slice %14 {offsets = [96, 0], sizes = [1, 64], strides = [1, 1]} : vector<104x64xf32> to vector<1x64xf32>
    %18 = vector.extract_strided_slice %14 {offsets = [97, 0], sizes = [1, 32], strides = [1, 1]} : vector<104x64xf32> to vector<1x32xf32>
    %19 = vector.extract_strided_slice %14 {offsets = [98, 0], sizes = [1, 32], strides = [1, 1]} : vector<104x64xf32> to vector<1x32xf32>
    %20 = vector.extract_strided_slice %14 {offsets = [99, 0], sizes = [1, 32], strides = [1, 1]} : vector<104x64xf32> to vector<1x32xf32>
    %21 = vector.extract_strided_slice %14 {offsets = [100, 0], sizes = [1, 32], strides = [1, 1]} : vector<104x64xf32> to vector<1x32xf32>
    %22 = vector.extract_strided_slice %14 {offsets = [101, 0], sizes = [1, 32], strides = [1, 1]} : vector<104x64xf32> to vector<1x32xf32>
    %23 = vector.extract_strided_slice %14 {offsets = [102, 0], sizes = [1, 32], strides = [1, 1]} : vector<104x64xf32> to vector<1x32xf32>
    %24 = arith.addf %0, %1 : vector<16x32xf32>
    %25 = tpu.concatenate %24, %12 in 1 : vector<16x32xf32>, vector<16x1xf32> -> vector<16x33xf32>
    %26 = vector.shape_cast %25 : vector<16x33xf32> to vector<1x16x33xf32>
    %27 = vector.shape_cast %26 : vector<1x16x33xf32> to vector<1x16x33xf32>
    %28 = vector.broadcast %27 : vector<1x16x33xf32> to vector<4x16x33xf32>
    %c0_13 = arith.constant 0 : index
    %c0_14 = arith.constant 0 : index
    %c0_15 = arith.constant 0 : index
    %c0_16 = arith.constant 0 : index
    %29 = vector.load %arg4[%c0_13, %c0_14, %c0_15, %c0_16] : memref<6x4x8x33xf32, #tpu.memory_space<vmem>>, vector<1x4x8x33xf32>
    %30 = vector.shape_cast %29 : vector<1x4x8x33xf32> to vector<4x8x33xf32>
    "tpu.trace_start"() <{level = 10 : i32, message = "hnd,hcd->hnc"}> : () -> ()
    %cst_17 = arith.constant dense<0.000000e+00> : vector<4x16x8xf32>
    %31 = tpu.matmul %28, %30, %cst_17 {dimension_numbers = #tpu.dot_dimension_numbers<[2], [2], [1], [1], [0, 0, 0, 1, 1, 1], [0], [0]>} : vector<4x16x33xf32>, vector<4x8x33xf32>, vector<4x16x8xf32> -> vector<4x16x8xf32>
    "tpu.trace_stop"() : () -> ()
    %c1 = arith.constant 1 : index
    %c0_18 = arith.constant 0 : index
    %c0_19 = arith.constant 0 : index
    %c0_20 = arith.constant 0 : index
    %32 = vector.load %arg4[%c1, %c0_18, %c0_19, %c0_20] : memref<6x4x8x33xf32, #tpu.memory_space<vmem>>, vector<1x4x8x33xf32>
    %33 = vector.shape_cast %32 : vector<1x4x8x33xf32> to vector<4x8x33xf32>
    "tpu.trace_start"() <{level = 10 : i32, message = "hnd,hcd->hnc"}> : () -> ()
    %cst_21 = arith.constant dense<0.000000e+00> : vector<4x16x8xf32>
    %34 = tpu.matmul %28, %33, %cst_21 {dimension_numbers = #tpu.dot_dimension_numbers<[2], [2], [1], [1], [0, 0, 0, 1, 1, 1], [0], [0]>} : vector<4x16x33xf32>, vector<4x8x33xf32>, vector<4x16x8xf32> -> vector<4x16x8xf32>
    "tpu.trace_stop"() : () -> ()
    %c2 = arith.constant 2 : index
    %c0_22 = arith.constant 0 : index
    %c0_23 = arith.constant 0 : index
    %c0_24 = arith.constant 0 : index
    %35 = vector.load %arg4[%c2, %c0_22, %c0_23, %c0_24] : memref<6x4x8x33xf32, #tpu.memory_space<vmem>>, vector<1x4x8x33xf32>
    %36 = vector.shape_cast %35 : vector<1x4x8x33xf32> to vector<4x8x33xf32>
    "tpu.trace_start"() <{level = 10 : i32, message = "hnd,hcd->hnc"}> : () -> ()
    %cst_25 = arith.constant dense<0.000000e+00> : vector<4x16x8xf32>
    %37 = tpu.matmul %28, %36, %cst_25 {dimension_numbers = #tpu.dot_dimension_numbers<[2], [2], [1], [1], [0, 0, 0, 1, 1, 1], [0], [0]>} : vector<4x16x33xf32>, vector<4x8x33xf32>, vector<4x16x8xf32> -> vector<4x16x8xf32>
    "tpu.trace_stop"() : () -> ()
    "tpu.trace_start"() <{level = 10 : i32, message = "hqd,hkd->hqk"}> : () -> ()
    %cst_26 = arith.constant dense<0.000000e+00> : vector<4x16x16xf32>
    %38 = tpu.matmul %31, %34, %cst_26 {dimension_numbers = #tpu.dot_dimension_numbers<[2], [2], [1], [1], [0, 0, 0, 1, 1, 1], [0], [0]>} : vector<4x16x8xf32>, vector<4x16x8xf32>, vector<4x16x16xf32> -> vector<4x16x16xf32>
    "tpu.trace_stop"() : () -> ()
    %39 = arith.addf %38, %11 : vector<4x16x16xf32>
    %cst_27 = arith.constant dense<0xFF800000> : vector<4x16xf32>
    %40 = vector.multi_reduction <maximumf>, %39, %cst_27 [2] : vector<4x16x16xf32> to vector<4x16xf32>
    %41 = vector.shape_cast %40 : vector<4x16xf32> to vector<4x16x1xf32>
    %42 = vector.broadcast %41 : vector<4x16x1xf32> to vector<4x16x16xf32>
    %43 = arith.subf %39, %42 : vector<4x16x16xf32>
    %44 = math.exp %43 : vector<4x16x16xf32>
    %cst_28 = arith.constant dense<0.000000e+00> : vector<4x16xf32>
    %45 = vector.multi_reduction <add>, %44, %cst_28 [2] : vector<4x16x16xf32> to vector<4x16xf32>
    %46 = vector.shape_cast %45 : vector<4x16xf32> to vector<4x16x1xf32>
    %47 = tpu.reciprocal %46 {approx = true} : vector<4x16x1xf32> -> vector<4x16x1xf32>
    %48 = vector.broadcast %47 : vector<4x16x1xf32> to vector<4x16x16xf32>
    %49 = arith.mulf %44, %48 : vector<4x16x16xf32>
    "tpu.trace_start"() <{level = 10 : i32, message = "hqk,hkd->hqd"}> : () -> ()
    %cst_29 = arith.constant dense<0.000000e+00> : vector<4x16x8xf32>
    %50 = tpu.matmul %49, %37, %cst_29 {dimension_numbers = #tpu.dot_dimension_numbers<[2], [1], [1], [2], [0, 0, 0, 1, 1, 2], [0], [0]>} : vector<4x16x16xf32>, vector<4x16x8xf32>, vector<4x16x8xf32> -> vector<4x16x8xf32>
    "tpu.trace_stop"() : () -> ()
    %c0_30 = arith.constant 0 : index
    %c0_31 = arith.constant 0 : index
    %c0_32 = arith.constant 0 : index
    %c0_33 = arith.constant 0 : index
    %51 = vector.load %arg5[%c0_30, %c0_31, %c0_32, %c0_33] : memref<2x4x8x32xf32, #tpu.memory_space<vmem>>, vector<1x4x8x32xf32>
    %52 = vector.shape_cast %51 : vector<1x4x8x32xf32> to vector<4x8x32xf32>
    "tpu.trace_start"() <{level = 10 : i32, message = "hnd,hdo->hno"}> : () -> ()
    %cst_34 = arith.constant dense<0.000000e+00> : vector<4x16x32xf32>
    %53 = tpu.matmul %50, %52, %cst_34 {dimension_numbers = #tpu.dot_dimension_numbers<[2], [1], [1], [2], [0, 0, 0, 1, 1, 2], [0], [0]>} : vector<4x16x8xf32>, vector<4x8x32xf32>, vector<4x16x32xf32> -> vector<4x16x32xf32>
    "tpu.trace_stop"() : () -> ()
    %cst_35 = arith.constant dense<0.000000e+00> : vector<16x32xf32>
    %54 = vector.multi_reduction <add>, %53, %cst_35 [0] : vector<4x16x32xf32> to vector<16x32xf32>
    %55 = vector.broadcast %18 : vector<1x32xf32> to vector<16x32xf32>
    %56 = arith.addf %54, %55 : vector<16x32xf32>
    %57 = arith.addf %0, %56 : vector<16x32xf32>
    %cst_36 = arith.constant dense<0.000000e+00> : vector<16xf32>
    %58 = vector.multi_reduction <add>, %57, %cst_36 [1] : vector<16x32xf32> to vector<16xf32>
    %59 = vector.shape_cast %58 : vector<16xf32> to vector<16x1xf32>
    %cst_37 = arith.constant 3.200000e+01 : f32
    %60 = vector.broadcast %cst_37 : f32 to vector<16x1xf32>
    %61 = arith.divf %59, %60 : vector<16x1xf32>
    %62 = vector.broadcast %61 : vector<16x1xf32> to vector<16x32xf32>
    %63 = arith.subf %57, %62 : vector<16x32xf32>
    %64 = arith.mulf %63, %63 : vector<16x32xf32>
    %cst_38 = arith.constant dense<0.000000e+00> : vector<16xf32>
    %65 = vector.multi_reduction <add>, %64, %cst_38 [1] : vector<16x32xf32> to vector<16xf32>
    %66 = vector.shape_cast %65 : vector<16xf32> to vector<16x1xf32>
    %cst_39 = arith.constant 3.200000e+01 : f32
    %67 = vector.broadcast %cst_39 : f32 to vector<16x1xf32>
    %68 = arith.divf %66, %67 : vector<16x1xf32>
    %69 = vector.broadcast %61 : vector<16x1xf32> to vector<16x32xf32>
    %70 = arith.subf %57, %69 : vector<16x32xf32>
    %cst_40 = arith.constant 9.99999974E-6 : f32
    %71 = vector.broadcast %cst_40 : f32 to vector<16x1xf32>
    %72 = arith.addf %68, %71 : vector<16x1xf32>
    %73 = math.rsqrt %72 : vector<16x1xf32>
    %74 = vector.broadcast %73 : vector<16x1xf32> to vector<16x32xf32>
    %75 = arith.mulf %70, %74 : vector<16x32xf32>
    %76 = vector.broadcast %19 : vector<1x32xf32> to vector<16x32xf32>
    %77 = arith.mulf %75, %76 : vector<16x32xf32>
    %78 = vector.broadcast %20 : vector<1x32xf32> to vector<16x32xf32>
    %79 = arith.addf %77, %78 : vector<16x32xf32>
    %cst_41 = arith.constant dense<0.000000e+00> : vector<16x64xf32>
    %80 = tpu.matmul %79, %15, %cst_41 {dimension_numbers = #tpu.dot_dimension_numbers<[1], [0], [0], [1], [0, 0, 1, 1], [], []>} : vector<16x32xf32>, vector<32x64xf32>, vector<16x64xf32> -> vector<16x64xf32>
    %81 = vector.broadcast %17 : vector<1x64xf32> to vector<16x64xf32>
    %82 = arith.addf %80, %81 : vector<16x64xf32>
    %cst_42 = arith.constant 0.000000e+00 : f32
    %83 = vector.broadcast %cst_42 : f32 to vector<16x64xf32>
    %84 = arith.maximumf %82, %83 : vector<16x64xf32>
    %cst_43 = arith.constant dense<0.000000e+00> : vector<16x32xf32>
    %85 = tpu.matmul %84, %16, %cst_43 {dimension_numbers = #tpu.dot_dimension_numbers<[1], [0], [0], [1], [0, 0, 1, 1], [], []>} : vector<16x64xf32>, vector<64x32xf32>, vector<16x32xf32> -> vector<16x32xf32>
    %86 = vector.broadcast %21 : vector<1x32xf32> to vector<16x32xf32>
    %87 = arith.addf %85, %86 : vector<16x32xf32>
    %88 = arith.addf %79, %87 : vector<16x32xf32>
    %cst_44 = arith.constant dense<0.000000e+00> : vector<16xf32>
    %89 = vector.multi_reduction <add>, %88, %cst_44 [1] : vector<16x32xf32> to vector<16xf32>
    %90 = vector.shape_cast %89 : vector<16xf32> to vector<16x1xf32>
    %cst_45 = arith.constant 3.200000e+01 : f32
    %91 = vector.broadcast %cst_45 : f32 to vector<16x1xf32>
    %92 = arith.divf %90, %91 : vector<16x1xf32>
    %93 = vector.broadcast %92 : vector<16x1xf32> to vector<16x32xf32>
    %94 = arith.subf %88, %93 : vector<16x32xf32>
    %95 = arith.mulf %94, %94 : vector<16x32xf32>
    %cst_46 = arith.constant dense<0.000000e+00> : vector<16xf32>
    %96 = vector.multi_reduction <add>, %95, %cst_46 [1] : vector<16x32xf32> to vector<16xf32>
    %97 = vector.shape_cast %96 : vector<16xf32> to vector<16x1xf32>
    %cst_47 = arith.constant 3.200000e+01 : f32
    %98 = vector.broadcast %cst_47 : f32 to vector<16x1xf32>
    %99 = arith.divf %97, %98 : vector<16x1xf32>
    %100 = vector.broadcast %92 : vector<16x1xf32> to vector<16x32xf32>
    %101 = arith.subf %88, %100 : vector<16x32xf32>
    %cst_48 = arith.constant 9.99999974E-6 : f32
    %102 = vector.broadcast %cst_48 : f32 to vector<16x1xf32>
    %103 = arith.addf %99, %102 : vector<16x1xf32>
    %104 = math.rsqrt %103 : vector<16x1xf32>
    %105 = vector.broadcast %104 : vector<16x1xf32> to vector<16x32xf32>
    %106 = arith.mulf %101, %105 : vector<16x32xf32>
    %107 = vector.broadcast %22 : vector<1x32xf32> to vector<16x32xf32>
    %108 = arith.mulf %106, %107 : vector<16x32xf32>
    %109 = vector.broadcast %23 : vector<1x32xf32> to vector<16x32xf32>
    %110 = arith.addf %108, %109 : vector<16x32xf32>
    %c1_49 = arith.constant 1 : index
    %c0_50 = arith.constant 0 : index
    %c0_51 = arith.constant 0 : index
    %111 = vector.load %arg6[%c1_49, %c0_50, %c0_51] : memref<2x104x64xf32, #tpu.memory_space<vmem>>, vector<1x104x64xf32>
    %112 = vector.shape_cast %111 : vector<1x104x64xf32> to vector<104x64xf32>
    %113 = vector.extract_strided_slice %112 {offsets = [0, 0], sizes = [32, 64], strides = [1, 1]} : vector<104x64xf32> to vector<32x64xf32>
    %114 = vector.extract_strided_slice %112 {offsets = [32, 0], sizes = [64, 32], strides = [1, 1]} : vector<104x64xf32> to vector<64x32xf32>
    %115 = vector.extract_strided_slice %112 {offsets = [96, 0], sizes = [1, 64], strides = [1, 1]} : vector<104x64xf32> to vector<1x64xf32>
    %116 = vector.extract_strided_slice %112 {offsets = [97, 0], sizes = [1, 32], strides = [1, 1]} : vector<104x64xf32> to vector<1x32xf32>
    %117 = vector.extract_strided_slice %112 {offsets = [98, 0], sizes = [1, 32], strides = [1, 1]} : vector<104x64xf32> to vector<1x32xf32>
    %118 = vector.extract_strided_slice %112 {offsets = [99, 0], sizes = [1, 32], strides = [1, 1]} : vector<104x64xf32> to vector<1x32xf32>
    %119 = vector.extract_strided_slice %112 {offsets = [100, 0], sizes = [1, 32], strides = [1, 1]} : vector<104x64xf32> to vector<1x32xf32>
    %120 = vector.extract_strided_slice %112 {offsets = [101, 0], sizes = [1, 32], strides = [1, 1]} : vector<104x64xf32> to vector<1x32xf32>
    %121 = vector.extract_strided_slice %112 {offsets = [102, 0], sizes = [1, 32], strides = [1, 1]} : vector<104x64xf32> to vector<1x32xf32>
    %122 = arith.addf %110, %1 : vector<16x32xf32>
    %123 = tpu.concatenate %122, %12 in 1 : vector<16x32xf32>, vector<16x1xf32> -> vector<16x33xf32>
    %124 = vector.shape_cast %123 : vector<16x33xf32> to vector<1x16x33xf32>
    %125 = vector.shape_cast %124 : vector<1x16x33xf32> to vector<1x16x33xf32>
    %126 = vector.broadcast %125 : vector<1x16x33xf32> to vector<4x16x33xf32>
    %c3 = arith.constant 3 : index
    %c0_52 = arith.constant 0 : index
    %c0_53 = arith.constant 0 : index
    %c0_54 = arith.constant 0 : index
    %127 = vector.load %arg4[%c3, %c0_52, %c0_53, %c0_54] : memref<6x4x8x33xf32, #tpu.memory_space<vmem>>, vector<1x4x8x33xf32>
    %128 = vector.shape_cast %127 : vector<1x4x8x33xf32> to vector<4x8x33xf32>
    "tpu.trace_start"() <{level = 10 : i32, message = "hnd,hcd->hnc"}> : () -> ()
    %cst_55 = arith.constant dense<0.000000e+00> : vector<4x16x8xf32>
    %129 = tpu.matmul %126, %128, %cst_55 {dimension_numbers = #tpu.dot_dimension_numbers<[2], [2], [1], [1], [0, 0, 0, 1, 1, 1], [0], [0]>} : vector<4x16x33xf32>, vector<4x8x33xf32>, vector<4x16x8xf32> -> vector<4x16x8xf32>
    "tpu.trace_stop"() : () -> ()
    %c4 = arith.constant 4 : index
    %c0_56 = arith.constant 0 : index
    %c0_57 = arith.constant 0 : index
    %c0_58 = arith.constant 0 : index
    %130 = vector.load %arg4[%c4, %c0_56, %c0_57, %c0_58] : memref<6x4x8x33xf32, #tpu.memory_space<vmem>>, vector<1x4x8x33xf32>
    %131 = vector.shape_cast %130 : vector<1x4x8x33xf32> to vector<4x8x33xf32>
    "tpu.trace_start"() <{level = 10 : i32, message = "hnd,hcd->hnc"}> : () -> ()
    %cst_59 = arith.constant dense<0.000000e+00> : vector<4x16x8xf32>
    %132 = tpu.matmul %126, %131, %cst_59 {dimension_numbers = #tpu.dot_dimension_numbers<[2], [2], [1], [1], [0, 0, 0, 1, 1, 1], [0], [0]>} : vector<4x16x33xf32>, vector<4x8x33xf32>, vector<4x16x8xf32> -> vector<4x16x8xf32>
    "tpu.trace_stop"() : () -> ()
    %c5 = arith.constant 5 : index
    %c0_60 = arith.constant 0 : index
    %c0_61 = arith.constant 0 : index
    %c0_62 = arith.constant 0 : index
    %133 = vector.load %arg4[%c5, %c0_60, %c0_61, %c0_62] : memref<6x4x8x33xf32, #tpu.memory_space<vmem>>, vector<1x4x8x33xf32>
    %134 = vector.shape_cast %133 : vector<1x4x8x33xf32> to vector<4x8x33xf32>
    "tpu.trace_start"() <{level = 10 : i32, message = "hnd,hcd->hnc"}> : () -> ()
    %cst_63 = arith.constant dense<0.000000e+00> : vector<4x16x8xf32>
    %135 = tpu.matmul %126, %134, %cst_63 {dimension_numbers = #tpu.dot_dimension_numbers<[2], [2], [1], [1], [0, 0, 0, 1, 1, 1], [0], [0]>} : vector<4x16x33xf32>, vector<4x8x33xf32>, vector<4x16x8xf32> -> vector<4x16x8xf32>
    "tpu.trace_stop"() : () -> ()
    "tpu.trace_start"() <{level = 10 : i32, message = "hqd,hkd->hqk"}> : () -> ()
    %cst_64 = arith.constant dense<0.000000e+00> : vector<4x16x16xf32>
    %136 = tpu.matmul %129, %132, %cst_64 {dimension_numbers = #tpu.dot_dimension_numbers<[2], [2], [1], [1], [0, 0, 0, 1, 1, 1], [0], [0]>} : vector<4x16x8xf32>, vector<4x16x8xf32>, vector<4x16x16xf32> -> vector<4x16x16xf32>
    "tpu.trace_stop"() : () -> ()
    %137 = arith.addf %136, %11 : vector<4x16x16xf32>
    %cst_65 = arith.constant dense<0xFF800000> : vector<4x16xf32>
    %138 = vector.multi_reduction <maximumf>, %137, %cst_65 [2] : vector<4x16x16xf32> to vector<4x16xf32>
    %139 = vector.shape_cast %138 : vector<4x16xf32> to vector<4x16x1xf32>
    %140 = vector.broadcast %139 : vector<4x16x1xf32> to vector<4x16x16xf32>
    %141 = arith.subf %137, %140 : vector<4x16x16xf32>
    %142 = math.exp %141 : vector<4x16x16xf32>
    %cst_66 = arith.constant dense<0.000000e+00> : vector<4x16xf32>
    %143 = vector.multi_reduction <add>, %142, %cst_66 [2] : vector<4x16x16xf32> to vector<4x16xf32>
    %144 = vector.shape_cast %143 : vector<4x16xf32> to vector<4x16x1xf32>
    %145 = tpu.reciprocal %144 {approx = true} : vector<4x16x1xf32> -> vector<4x16x1xf32>
    %146 = vector.broadcast %145 : vector<4x16x1xf32> to vector<4x16x16xf32>
    %147 = arith.mulf %142, %146 : vector<4x16x16xf32>
    "tpu.trace_start"() <{level = 10 : i32, message = "hqk,hkd->hqd"}> : () -> ()
    %cst_67 = arith.constant dense<0.000000e+00> : vector<4x16x8xf32>
    %148 = tpu.matmul %147, %135, %cst_67 {dimension_numbers = #tpu.dot_dimension_numbers<[2], [1], [1], [2], [0, 0, 0, 1, 1, 2], [0], [0]>} : vector<4x16x16xf32>, vector<4x16x8xf32>, vector<4x16x8xf32> -> vector<4x16x8xf32>
    "tpu.trace_stop"() : () -> ()
    %c1_68 = arith.constant 1 : index
    %c0_69 = arith.constant 0 : index
    %c0_70 = arith.constant 0 : index
    %c0_71 = arith.constant 0 : index
    %149 = vector.load %arg5[%c1_68, %c0_69, %c0_70, %c0_71] : memref<2x4x8x32xf32, #tpu.memory_space<vmem>>, vector<1x4x8x32xf32>
    %150 = vector.shape_cast %149 : vector<1x4x8x32xf32> to vector<4x8x32xf32>
    "tpu.trace_start"() <{level = 10 : i32, message = "hnd,hdo->hno"}> : () -> ()
    %cst_72 = arith.constant dense<0.000000e+00> : vector<4x16x32xf32>
    %151 = tpu.matmul %148, %150, %cst_72 {dimension_numbers = #tpu.dot_dimension_numbers<[2], [1], [1], [2], [0, 0, 0, 1, 1, 2], [0], [0]>} : vector<4x16x8xf32>, vector<4x8x32xf32>, vector<4x16x32xf32> -> vector<4x16x32xf32>
    "tpu.trace_stop"() : () -> ()
    %cst_73 = arith.constant dense<0.000000e+00> : vector<16x32xf32>
    %152 = vector.multi_reduction <add>, %151, %cst_73 [0] : vector<4x16x32xf32> to vector<16x32xf32>
    %153 = vector.broadcast %116 : vector<1x32xf32> to vector<16x32xf32>
    %154 = arith.addf %152, %153 : vector<16x32xf32>
    %155 = arith.addf %110, %154 : vector<16x32xf32>
    %cst_74 = arith.constant dense<0.000000e+00> : vector<16xf32>
    %156 = vector.multi_reduction <add>, %155, %cst_74 [1] : vector<16x32xf32> to vector<16xf32>
    %157 = vector.shape_cast %156 : vector<16xf32> to vector<16x1xf32>
    %cst_75 = arith.constant 3.200000e+01 : f32
    %158 = vector.broadcast %cst_75 : f32 to vector<16x1xf32>
    %159 = arith.divf %157, %158 : vector<16x1xf32>
    %160 = vector.broadcast %159 : vector<16x1xf32> to vector<16x32xf32>
    %161 = arith.subf %155, %160 : vector<16x32xf32>
    %162 = arith.mulf %161, %161 : vector<16x32xf32>
    %cst_76 = arith.constant dense<0.000000e+00> : vector<16xf32>
    %163 = vector.multi_reduction <add>, %162, %cst_76 [1] : vector<16x32xf32> to vector<16xf32>
    %164 = vector.shape_cast %163 : vector<16xf32> to vector<16x1xf32>
    %cst_77 = arith.constant 3.200000e+01 : f32
    %165 = vector.broadcast %cst_77 : f32 to vector<16x1xf32>
    %166 = arith.divf %164, %165 : vector<16x1xf32>
    %167 = vector.broadcast %159 : vector<16x1xf32> to vector<16x32xf32>
    %168 = arith.subf %155, %167 : vector<16x32xf32>
    %cst_78 = arith.constant 9.99999974E-6 : f32
    %169 = vector.broadcast %cst_78 : f32 to vector<16x1xf32>
    %170 = arith.addf %166, %169 : vector<16x1xf32>
    %171 = math.rsqrt %170 : vector<16x1xf32>
    %172 = vector.broadcast %171 : vector<16x1xf32> to vector<16x32xf32>
    %173 = arith.mulf %168, %172 : vector<16x32xf32>
    %174 = vector.broadcast %117 : vector<1x32xf32> to vector<16x32xf32>
    %175 = arith.mulf %173, %174 : vector<16x32xf32>
    %176 = vector.broadcast %118 : vector<1x32xf32> to vector<16x32xf32>
    %177 = arith.addf %175, %176 : vector<16x32xf32>
    %cst_79 = arith.constant dense<0.000000e+00> : vector<16x64xf32>
    %178 = tpu.matmul %177, %113, %cst_79 {dimension_numbers = #tpu.dot_dimension_numbers<[1], [0], [0], [1], [0, 0, 1, 1], [], []>} : vector<16x32xf32>, vector<32x64xf32>, vector<16x64xf32> -> vector<16x64xf32>
    %179 = vector.broadcast %115 : vector<1x64xf32> to vector<16x64xf32>
    %180 = arith.addf %178, %179 : vector<16x64xf32>
    %cst_80 = arith.constant 0.000000e+00 : f32
    %181 = vector.broadcast %cst_80 : f32 to vector<16x64xf32>
    %182 = arith.maximumf %180, %181 : vector<16x64xf32>
    %cst_81 = arith.constant dense<0.000000e+00> : vector<16x32xf32>
    %183 = tpu.matmul %182, %114, %cst_81 {dimension_numbers = #tpu.dot_dimension_numbers<[1], [0], [0], [1], [0, 0, 1, 1], [], []>} : vector<16x64xf32>, vector<64x32xf32>, vector<16x32xf32> -> vector<16x32xf32>
    %184 = vector.broadcast %119 : vector<1x32xf32> to vector<16x32xf32>
    %185 = arith.addf %183, %184 : vector<16x32xf32>
    %186 = arith.addf %177, %185 : vector<16x32xf32>
    %cst_82 = arith.constant dense<0.000000e+00> : vector<16xf32>
    %187 = vector.multi_reduction <add>, %186, %cst_82 [1] : vector<16x32xf32> to vector<16xf32>
    %188 = vector.shape_cast %187 : vector<16xf32> to vector<16x1xf32>
    %cst_83 = arith.constant 3.200000e+01 : f32
    %189 = vector.broadcast %cst_83 : f32 to vector<16x1xf32>
    %190 = arith.divf %188, %189 : vector<16x1xf32>
    %191 = vector.broadcast %190 : vector<16x1xf32> to vector<16x32xf32>
    %192 = arith.subf %186, %191 : vector<16x32xf32>
    %193 = arith.mulf %192, %192 : vector<16x32xf32>
    %cst_84 = arith.constant dense<0.000000e+00> : vector<16xf32>
    %194 = vector.multi_reduction <add>, %193, %cst_84 [1] : vector<16x32xf32> to vector<16xf32>
    %195 = vector.shape_cast %194 : vector<16xf32> to vector<16x1xf32>
    %cst_85 = arith.constant 3.200000e+01 : f32
    %196 = vector.broadcast %cst_85 : f32 to vector<16x1xf32>
    %197 = arith.divf %195, %196 : vector<16x1xf32>
    %198 = vector.broadcast %190 : vector<16x1xf32> to vector<16x32xf32>
    %199 = arith.subf %186, %198 : vector<16x32xf32>
    %cst_86 = arith.constant 9.99999974E-6 : f32
    %200 = vector.broadcast %cst_86 : f32 to vector<16x1xf32>
    %201 = arith.addf %197, %200 : vector<16x1xf32>
    %202 = math.rsqrt %201 : vector<16x1xf32>
    %203 = vector.broadcast %202 : vector<16x1xf32> to vector<16x32xf32>
    %204 = arith.mulf %199, %203 : vector<16x32xf32>
    %205 = vector.broadcast %120 : vector<1x32xf32> to vector<16x32xf32>
    %206 = arith.mulf %204, %205 : vector<16x32xf32>
    %207 = vector.broadcast %121 : vector<1x32xf32> to vector<16x32xf32>
    %208 = arith.addf %206, %207 : vector<16x32xf32>
    %c0_87 = arith.constant 0 : index
    %c0_88 = arith.constant 0 : index
    %209 = vector.load %arg7[%c0_87, %c0_88] : memref<16x32xf32, #tpu.memory_space<vmem>>, vector<16x32xf32>
    tpu.vector_store %arg7[%c0_87, %c0_88], %208 {strides = array<i32>} : memref<16x32xf32, #tpu.memory_space<vmem>>, vector<16x32xf32>,
    return
  }
  func.func @transform_0(%arg0: i32) -> (i32, i32) {
    %c0_i32 = arith.constant 0 : i32
    %c0_i32_0 = arith.constant 0 : i32
    return %arg0, %c0_i32 : i32, i32
  }
  func.func @transform_1(%arg0: i32) -> (i32, i32) {
    %c0_i32 = arith.constant 0 : i32
    %c0_i32_0 = arith.constant 0 : i32
    return %arg0, %c0_i32 : i32, i32
  }
  func.func @transform_2(%arg0: i32) -> (i32, i32, i32) {
    %c0_i32 = arith.constant 0 : i32
    %c0_i32_0 = arith.constant 0 : i32
    %c0_i32_1 = arith.constant 0 : i32
    %c0_i32_2 = arith.constant 0 : i32
    return %c0_i32, %c0_i32_0, %c0_i32_1 : i32, i32, i32
  }
  func.func @transform_3(%arg0: i32) -> (i32, i32, i32, i32) {
    %c0_i32 = arith.constant 0 : i32
    %c0_i32_0 = arith.constant 0 : i32
    %c0_i32_1 = arith.constant 0 : i32
    %c0_i32_2 = arith.constant 0 : i32
    %c0_i32_3 = arith.constant 0 : i32
    return %c0_i32, %c0_i32_0, %c0_i32_1, %c0_i32_2 : i32, i32, i32, i32
  }
  func.func @transform_4(%arg0: i32) -> (i32, i32, i32, i32) {
    %c0_i32 = arith.constant 0 : i32
    %c0_i32_0 = arith.constant 0 : i32
    %c0_i32_1 = arith.constant 0 : i32
    %c0_i32_2 = arith.constant 0 : i32
    %c0_i32_3 = arith.constant 0 : i32
    return %c0_i32, %c0_i32_0, %c0_i32_1, %c0_i32_2 : i32, i32, i32, i32
  }
  func.func @transform_5(%arg0: i32) -> (i32, i32, i32) {
    %c0_i32 = arith.constant 0 : i32
    %c0_i32_0 = arith.constant 0 : i32
    %c0_i32_1 = arith.constant 0 : i32
    %c0_i32_2 = arith.constant 0 : i32
    return %c0_i32, %c0_i32_0, %c0_i32_1 : i32, i32, i32
  }
  func.func @transform_6(%arg0: i32) -> (i32, i32) {
    %c0_i32 = arith.constant 0 : i32
    %c0_i32_0 = arith.constant 0 : i32
    return %arg0, %c0_i32 : i32, i32
  }
}

</mosaic_0001>

<bundles_post_ra>
// kernel: multi_level_encoder.1
= control target key start
LH: loop header
LB: loop body
LE: loop exit
PB: predicated region body
PF: predicated region fallthrough
CT: control target
= control target key end

     0   :  { %11 = vsyncpa [#allocation3], 0  ;;  %s6867_s0 = inlined_call_operand.vmem [shape: f32[32,32], index: 0, kind: input, shape index: {}]   ;;  %s6868_s1 = inlined_call_operand.vmem [shape: f32[32,32], index: 1, kind: input, shape index: {}]   ;;  %s6869_s2 = inlined_call_operand.vmem [shape: f32[4,16,16], index: 2, kind: input, shape index: {}]   ;;  %s6870_s3 = inlined_call_operand.vmem [shape: f32[6,4,8,33], index: 3, kind: input, shape index: {}]   ;;  %s6871_s4 = inlined_call_operand.vmem [shape: f32[2,4,8,32], index: 4, kind: input, shape index: {}]   ;;  %s6872_s5 = inlined_call_operand.vmem [shape: f32[2,104,64], index: 5, kind: input, shape index: {}]   ;;  %s6873_s6 = inlined_call_operand.hbm [shape: f32[32,32], index: 6, kind: output, shape index: {}]  }
   0x1   :  { %13 = vsyncpa [#allocation3 + $0x1], 0  ;;  %s6171_s21 = smov 0   ;;  %s6173_s22 = smov 0  }
   0x2   :  { %s6175_s23 = smov 0   ;;  %s6177_s24 = smov 0  }
   0x3 LB: > { %s6192_s25 = sadd.s32 4294967295, %s6130_s24   ;;  %s5098_s26 = sadd.s32 4294967294, %s6130_s24   ;;  %s6130_s24 = sphi %s6177_s24, %s6881_s24   ;;  %s6126_s23 = sphi %s6175_s23, %s6880_s23   ;;  %s6122_s22 = sphi %s6173_s22, %s6879_s22   ;;  %s6118_s21 = sphi %s6171_s21, %s6878_s21  }
   0x4   : > { %s6196_s27 = sadd.s32 1, %s6130_s24   ;;  %s162_s28 = sadd.s32 1, %s6126_s23 }
   0x5   : > { %s159_s29 = ssub.s32 %s6130_s24, %s6196_s27  ;;  %p172_p0 = scmp.ne.s32.totalorder %s6126_s23, %s6122_s22 }
   0x6   : > { %p160_p1 = scmp.eq.s32.totalorder %s159_s29, 0  ;;  %p173_p2 = scmp.eq.s32.totalorder %s6192_s25, 1 }
   0x7   : > { %p178_p3 = scmp.ne.s32.totalorder %s6122_s22, %s6118_s21  ;;  %p179_p4 = scmp.eq.s32.totalorder %s5098_s26, 1 }
   0x8   : > { %s6207_s30 = scalar_select %p160_p1, %s6126_s23, %s162_s28  }
   0x9   : > { %p6209_p5 = por %p173_p2, %p172_p0  ;;  %p6213_p6 = por %p179_p4, %p178_p3 }
   0xa   : > { %p5101_p7 = scmp.ge.s32.totalorder %s6130_s24, 1  ;;  %p227_p8 = scmp.lt.s32.totalorder %s6130_s24, 3 }
   0xc   : > { %p228_p9 = pnand %p5101_p7, %p227_p8 }
   0xd   : > { %v351_v0 = vld [vmem:[%s6870_s3] sm:$0xff] (!%p228_p9)  ;;  %vm355_vm0 = vcmask (!%p228_p9), 269312   ;;  %v354_v1 = vld [vmem:[%s6870_s3 + $0x18] sm:$0xff] (!%p228_p9)  ;;  %s5103_s13 = sshll.u32 (!%p228_p9), %s6192_s25, 1  ;;  %v352_v2 = vld [vmem:[%s6870_s3 + $0x8] sm:$0xff] (!%p228_p9)  ;;  %vm279_vm1 = vcmask (!%p228_p9), 261120   ;;  %v300_v55 = vlaneseq (!%p228_p9) }
   0xe   : > { %231 = sbr.rel (%p228_p9) target bundleno = 4595 (0x11f3), region = 44  ;;  %5486 = vmatprep.subr.msk.mxu0 (!%p228_p9), %vm355_vm0, %v351_v0  ;;  %5501 = vmatprep.subr.msk.mxu1 (!%p228_p9), %vm355_vm0, %v354_v1  ;;  %p263_p10 = scmp.lt.s32.totalorder (!%p228_p9), %s5103_s13, 3  ;;  %v5120_v3 = vld [vmem:[%s6870_s3 + $0x28] sm:$0xff] (!%p228_p9)  ;;  %v353_v12 = vld [vmem:[%s6870_s3 + $0x10] sm:$0xff] (!%p228_p9)  ;;  %v5122_v13 = vld [vmem:[%s6870_s3 + $0x38] sm:$0xff] (!%p228_p9)  ;;  %vm1308_vm2 = vcmask (!%p228_p9), 64512  }
   0xf   : > { %5487 = vmatpush3.xpose.msk.msra.mxu0 (!%p228_p9), %vm355_vm0, %v351_v0  ;;  %5502 = vmatpush3.xpose.msk.msra.mxu1 (!%p228_p9), %vm355_vm0, %v354_v1  ;;  %v5119_v14 = vld [vmem:[%s6870_s3 + $0x20] sm:$0xff] (!%p228_p9)  ;;  %v5136_v15 = vld [vmem:[%s6870_s3 + $0x48] sm:$0xff] (!%p228_p9)  ;;  %v5121_v16 = vld [vmem:[%s6870_s3 + $0x30] sm:$0xff] (!%p228_p9)  ;;  %v301_v57 = vand.u32 (!%p228_p9), 127, %v300_v55  ;;  %v6364_v59 = vshrl.u32 (!%p228_p9), %v300_v55, 7  ;;  %v6132_v63 = vmov (!%p228_p9), 0.0  }
  0x10   : > { %5491 = vmatprep.subr.msk.mxu0 (!%p228_p9), %vm355_vm0, %v352_v2  ;;  %5511 = vmatprep.subr.msk.mxu1 (!%p228_p9), %vm355_vm0, %v5120_v3  ;;  %v5135_v17 = vld [vmem:[%s6870_s3 + $0x40] sm:$0xff] (!%p228_p9)  ;;  %v5137_v18 = vld [vmem:[%s6870_s3 + $0x50] sm:$0xff] (!%p228_p9)  ;;  %v5138_v19 = vld [vmem:[%s6870_s3 + $0x58] sm:$0xff] (!%p228_p9)  ;;  %vm311_vm6 = vcmask (!%p228_p9), 130112   ;;  %vm1657_vm7 = vcmask (!%p228_p9), 130048   ;;  %vm2550_vm8 = vcmask (!%p228_p9), 523264  }
  0x11   : > { %vm6331_vm3 = vmpackc.low (!%p228_p9), %vm1308_vm2, %vm1308_vm2  ;;  %v306_v60 = vadd.s32 (!%p228_p9), 4294967288, %v301_v57  ;;  %v304_v61 = vsub.s32 (!%p228_p9), %v301_v57, %v6364_v59  ;;  %s259_s14 = sand.u32 (!%p228_p9), 1, %s6122_s22   ;;  %s5293_s16 = sshll.u32 (!%p228_p9), %s6192_s25, 8 }
  0x12   : > { %s5102_s15 = sshll.u32 (!%p228_p9), %s259_s14, 4  ;;  %s6826_s25 = scalar_lea.sflag (!%p228_p9), [#allocation3], %s259_s14 }
  0x13   : > { %v309_v62 = vsub.s32 (!%p228_p9), %v306_v60, %v6364_v59  ;;  %s261_s17 = scalar_lea.vmem (!%p228_p9), [#allocation2], %s5102_s15  ;;  %s6133_s29 = smov (!%p228_p9), [#allocation2]  }
  0x15   : > { %s6883_s13 = smov (!%p263_p10, %s5103_s13), 3 }
  0x16   : > { %s5104_s18 = sshll.u32 %s6883_s13, 3 }
  0x17   : > { %s266_s26 = scalar_lea.vmem %s6867_s0, %s5104_s18  ;;  %s272_s9 = scalar_lea.vmem %s6868_s1, %s5104_s18 }
  0x18   : > { %v6244_v4 = vld [vmem:[%s266_s26] sm:$0xff]  ;;  %v6248_v6 = vld [vmem:[%s266_s26 + $0x8] sm:$0xff]  ;;  %s5024_s18 = sshll.u32 %s261_s17, 4  ;;  %s6820_s26 = scalar_lea.hbm %s6873_s6, %s5293_s16  ;;  %s6822_s18 = int_to_ptr.vmem [resolvable:$true] %s5024_s18 }
  0x19   : > { %v6246_v5 = vld [vmem:[%s272_s9] sm:$0xff]  ;;  %v6252_v8 = vld [vmem:[%s272_s9 + $0x8] sm:$0xff]  ;;  %v280_v20 = vsel %vm279_vm1, %v6244_v4, 0.0  ;;  %v283_v21 = vsel %vm279_vm1, %v6248_v6, 0.0  ;;  %s6068_s28 = scalar_lea.vmem %s6822_s18, 256  ;;  %s6072_s9 = sshll.u32 %s6133_s29, 4  ;;  %s6073_s9 = int_to_ptr.vmem [resolvable:$false] %s6072_s9 }
  0x1a   : > { %v347_v7 = vadd.f32 %v6246_v5, %v6244_v4  ;;  %v348_v9 = vadd.f32 %v6252_v8, %v6248_v6  ;;  %281 = vadd.xlane.f32.xlu0 %v280_v20  ;;  %v290_v20 = vld [vmem:[%s6869_s2] sm:$0xff]  ;;  %p6069_p11 = scmp.ne.s32.totalorder %s6822_s18, %s6068_s28  ;;  %s6074_s10 = scalar_lea.vmem %s6073_s9, 512 }
  0x1b   : > { %p6075_p0 = scmp.lt.s32.totalorder %s6822_s18, %s6073_s9  ;;  %p6076_p1 = scmp.lt.s32.totalorder %s6074_s10, %s6068_s28 }
  0x1c   : > { %v349_v10 = vsel %vm279_vm1, %v347_v7, 1.0  ;;  %v350_v11 = vsel %vm279_vm1, %v348_v9, 1.0  ;;  %v293_v9 = vld [vmem:[%s6869_s2 + $0x18] sm:$0xff]  ;;  %p6070_p12 = pnand %p6069_p11, %p6209_p5 }
  0x1d   : > { %5488 = vmatprep.mubr.msk.f32.mxu0 %vm355_vm0, %v349_v10  ;;  %5503 = vmatprep.mubr.msk.f32.mxu1 %vm355_vm0, %v349_v10  ;;  %p6077_p2 = por %p6076_p1, %p6075_p0 }
  0x1e   : > { %5489 = vmatmul.mubr.msk.f32.vlgmr.msra.gmra.mrb[0].mxu0 %vm355_vm0, %v350_v11  ;;  %5504 = vmatmul.mubr.msk.f32.vlgmr.msra.gmra.mrb[0].mxu1 %vm355_vm0, %v350_v11  ;;  %p6071_p13 = pneg %p6070_p12 }
  0x1f   : > { %5492 = vmatpush3.xpose.msk.msra.mxu0 %vm355_vm0, %v352_v2  ;;  %5512 = vmatpush3.xpose.msk.msra.mxu1 %vm355_vm0, %v5120_v3 }
  0x20   : > { %5493 = vmatprep.mubr.msk.f32.mxu0 %vm355_vm0, %v349_v10  ;;  %5496 = vmatprep.subr.msk.mxu0 %vm355_vm0, %v353_v12  ;;  %p6078_p3 = pnand %p6077_p2, %p6071_p13 }
  0x21   : > { %5513 = vmatprep.mubr.msk.f32.mxu1 %vm355_vm0, %v349_v10  ;;  %5521 = vmatprep.subr.msk.mxu1 %vm355_vm0, %v5122_v13 }
  0x22   : > { %5494 = vmatmul.mubr.msk.f32.vlgmr.msra.gmra.mrb[2].mxu0 %vm355_vm0, %v350_v11  ;;  %5514 = vmatmul.mubr.msk.f32.vlgmr.msra.gmra.mrb[2].mxu1 %vm355_vm0, %v350_v11 }
  0x23   : > { %5497 = vmatpush3.xpose.msk.msra.mxu0 %vm355_vm0, %v353_v12  ;;  %5498 = vmatprep.mubr.msk.f32.mxu0 %vm355_vm0, %v349_v10 }
  0x24   : > { %5506 = vmatprep.subr.msk.mxu0 %vm355_vm0, %v5119_v14  ;;  %5522 = vmatpush3.xpose.msk.msra.mxu1 %vm355_vm0, %v5122_v13 }
  0x25   : > { %5523 = vmatprep.mubr.msk.f32.mxu1 %vm355_vm0, %v349_v10  ;;  %5531 = vmatprep.subr.msk.mxu1 %vm355_vm0, %v5136_v15 }
  0x26   : > { %5499 = vmatmul.mubr.msk.f32.vlgmr.msra.gmra.mrb[4].mxu0 %vm355_vm0, %v350_v11  ;;  %284 = vadd.xlane.f32.xlu0 %v283_v21 }
  0x27   : > { %5507 = vmatpush3.xpose.msk.msra.mxu0 %vm355_vm0, %v5119_v14  ;;  %5508 = vmatprep.mubr.msk.f32.mxu0 %vm355_vm0, %v349_v10 }
  0x28   : > { %5524 = vmatmul.mubr.msk.f32.vlgmr.msra.gmra.mrb[4].mxu1 %vm355_vm0, %v350_v11  ;;  %5516 = vmatprep.subr.msk.mxu0 %vm355_vm0, %v5121_v16 }
  0x29   : > { %5532 = vmatpush3.xpose.msk.msra.mxu1 %vm355_vm0, %v5136_v15  ;;  %5533 = vmatprep.mubr.msk.f32.mxu1 %vm355_vm0, %v349_v10 }
  0x2a   : > { %5509 = vmatmul.mubr.msk.f32.vlgmr.msra.gmra.mrb[6].mxu0 %vm355_vm0, %v350_v11  ;;  %5541 = vmatprep.subr.msk.mxu1 %vm355_vm0, %v5138_v19 }
  0x2b   : > { %5517 = vmatpush3.xpose.msk.msra.mxu0 %vm355_vm0, %v5121_v16  ;;  %5518 = vmatprep.mubr.msk.f32.mxu0 %vm355_vm0, %v349_v10 }
  0x2c   : > { %5526 = vmatprep.subr.msk.mxu0 %vm355_vm0, %v5135_v17  ;;  %5534 = vmatmul.mubr.msk.f32.vlgmr.msra.gmra.mrb[6].mxu1 %vm355_vm0, %v350_v11 }
  0x2d   : > { %5543 = vmatprep.mubr.msk.f32.mxu1 %vm355_vm0, %v349_v10  ;;  %5542 = vmatpush3.xpose.msk.msra.mxu1 %vm355_vm0, %v5138_v19  ;;  %v291_v19 = vld [vmem:[%s6869_s2 + $0x8] sm:$0xff] }
  0x2e   : > { %5519 = vmatmul.mubr.msk.f32.vlgmr.msra.gmra.mrb[8].mxu0 %vm355_vm0, %v350_v11 }
  0x2f   : > { %5527 = vmatpush3.xpose.msk.msra.mxu0 %vm355_vm0, %v5135_v17  ;;  %5528 = vmatprep.mubr.msk.f32.mxu0 %vm355_vm0, %v349_v10 }
  0x30   : > { %5536 = vmatprep.subr.msk.mxu0 %vm355_vm0, %v5137_v18  ;;  %5544 = vmatmul.mubr.msk.f32.vlgmr.msra.gmra.mrb[8].mxu1 %vm355_vm0, %v350_v11 }
  0x32   : > { %5529 = vmatmul.mubr.msk.f32.vlgmr.msra.gmra.mrb[10].mxu0 %vm355_vm0, %v350_v11 }
  0x33   : > { %5537 = vmatpush3.xpose.msk.msra.mxu0 %vm355_vm0, %v5137_v18  ;;  %5538 = vmatprep.mubr.msk.f32.mxu0 %vm355_vm0, %v349_v10  ;;  %v292_v10 = vld [vmem:[%s6869_s2 + $0x10] sm:$0xff] }
  0x36   : > { %5539 = vmatmul.mubr.msk.f32.vlgmr.msra.gmra.mrb[12].mxu0 %vm355_vm0, %v350_v11 }
  0xa7   : > { %v282_v56 = vpop.xlane.xlu0 %281 }
  0xa8   : > { %vm286_vm4 = vcmp.eq.f32.partialorder %v282_v56, 0.0 }
  0xa9   : > { %v288_v0 = vsel %vm286_vm4, -1e+30, %v6132_v63 }
  0xaa   : > { %v305_v2 = vrot.slane %v288_v0, %v304_v61 }
  0xb3   : > { %v285_v58 = vpop.xlane.xlu0 %284 }
  0xb4   : > { %vm287_vm5 = vcmp.eq.f32.partialorder %v285_v58, 0.0 }
  0xb5   : > { %v289_v1 = vsel %vm287_vm5, -1e+30, %v6132_v63 }
  0xb6   : > { %v310_v3 = vrot.slane %v289_v1, %v309_v62 }
  0xb8   : > { %v312_v7 = vsel %vm311_vm6, %v310_v3, %v305_v2 }
  0xb9   : > { %v6374_v11 = vadd.f32 %v312_v7, %v293_v9  ;;  %v6376_v12 = vadd.f32 %v312_v7, %v292_v10  ;;  %v6388_v21 = vadd.f32 %v312_v7, %v291_v19 }
  0xf1   : > { %v5490_v22 = vpop.f32.mrb[0].mxu0  ;;  %v5505_v23 = vpop.f32.mrb[0].mxu1 }
  0xf2   : > { %v431_v24 = vpop.f32.mrb[1].mxu0  ;;  %v665_v25 = vpop.f32.mrb[1].mxu1 }
  0xf3   : > { %5550 = vmatprep.mubr.msk.f32.mxu0 %vm1308_vm2, %v431_v24 }
  0xf5   : > { %v5495_v26 = vpop.f32.mrb[2].mxu0  ;;  %v5515_v27 = vpop.f32.mrb[2].mxu1 }
  0xf6   : > { %v509_v28 = vpop.f32.mrb[3].mxu0  ;;  %v826_v29 = vpop.f32.mrb[3].mxu1 }
  0xf7   : > { %v5824_v31 = vpack.c.bf16 %v5515_v27, %v826_v29  ;;  %5557 = vmatprep.mubr.msk.f32.mxu1 %vm1308_vm2, %v509_v28 }
  0xf9   : > { %v5500_v32 = vpop.f32.mrb[4].mxu0  ;;  %5826 = vmatprep.subr.msk.bf16.mxu1 %vm6331_vm3, %v5824_v31 }
  0xfa   : > { %v587_v33 = vpop.f32.mrb[5].mxu0  ;;  %5829 = vmatpush3.bf16.xpose.msk.msra.mxu1 %vm6331_vm3, %v5824_v31  ;;  %v295_v31 = vld [vmem:[%s6869_s2 + $0x28] sm:$0xff] }
  0xfb   : > { %v5525_v34 = vpop.f32.mrb[4].mxu1 }
  0xfc   : > { %v982_v35 = vpop.f32.mrb[5].mxu1 }
  0xfd   : > { %v5510_v36 = vpop.f32.mrb[6].mxu0  ;;  %v5836_v37 = vpack.c.bf16 %v5525_v34, %v982_v35  ;;  %v296_v34 = vld [vmem:[%s6869_s2 + $0x30] sm:$0xff]  ;;  %v6407_v35 = vadd.f32 %v312_v7, %v295_v31 }
  0xfe   : > { %v748_v38 = vpop.f32.mrb[7].mxu0 }
  0xff   : > { %v5818_v39 = vpack.c.bf16 %v5510_v36, %v748_v38  ;;  %5838 = vmatprep.subr.msk.bf16.mxu1 %vm6331_vm3, %v5836_v37  ;;  %v5535_v40 = vpop.f32.mrb[6].mxu1 }
 0x100   : > { %v1143_v41 = vpop.f32.mrb[7].mxu1 }
 0x101   : > { %5820 = vmatprep.subr.msk.bf16.mxu0 %vm6331_vm3, %v5818_v39  ;;  %5558 = vmatmul.mubr.msk.f32.vlgmr.msra.gmra.mrb[10].mxu1 %vm1308_vm2, %v5495_v26  ;;  %v5520_v42 = vpop.f32.mrb[8].mxu0  ;;  %v5846_v43 = vpack.c.bf16 %v5535_v40, %v1143_v41 }
 0x102   : > { %5823 = vmatpush3.bf16.xpose.msk.msra.mxu0 %vm6331_vm3, %v5818_v39  ;;  %5841 = vmatpush3.bf16.xpose.msk.msra.mxu1 %vm6331_vm3, %v5836_v37  ;;  %v904_v44 = vpop.f32.mrb[9].mxu0 }
 0x103   : > { %5571 = vmatprep.mubr.msk.f32.mxu1 %vm1308_vm2, %v665_v25  ;;  %v5830_v45 = vpack.c.bf16 %v5520_v42, %v904_v44  ;;  %5847 = vmatprep.subr.bf16.mxu1 %v5846_v43  ;;  %v5545_v50 = vpop.f32.mrb[8].mxu1  ;;  %v6391_v25 = vadd.f32 %v312_v7, %v290_v20  ;;  %v6415_v42 = vadd.f32 %v312_v7, %v296_v34 }
 0x104   : > { %v1299_v51 = vpop.f32.mrb[9].mxu1 }
 0x105   : > { %5832 = vmatprep.subr.msk.bf16.mxu0 %vm6331_vm3, %v5830_v45  ;;  %v5530_v46 = vpop.f32.mrb[10].mxu0  ;;  %v6358_v52 = vpack.c.bf16 %v5545_v50, %v1299_v51 }
 0x106   : > { %v1065_v47 = vpop.f32.mrb[11].mxu0 }
 0x107   : > { %v5842_v48 = vpack.c.bf16 %v5530_v46, %v1065_v47 }
 0x109   : > { %5551 = vmatmul.mubr.msk.f32.vlgmr.msra.gmra.mrb[14].mxu0 %vm1308_vm2, %v5490_v22  ;;  %5572 = vmatmul.mubr.msk.f32.vlgmr.msra.gmra.mrb[12].mxu1 %vm1308_vm2, %v5505_v23  ;;  %v5540_v49 = vpop.f32.mrb[12].mxu0 }
 0x10a   : > { %5835 = vmatpush3.bf16.xpose.msk.msra.mxu0 %vm6331_vm3, %v5830_v45  ;;  %5564 = vmatprep.mubr.msk.f32.mxu0 %vm1308_vm2, %v587_v33  ;;  %v1221_v53 = vpop.f32.mrb[13].mxu0  ;;  %v297_v33 = vld [vmem:[%s6869_s2 + $0x38] sm:$0xff] }
 0x10b   : > { %5849 = vmatpush3.bf16.msra.mxu1 %v5846_v43  ;;  %5843 = vmatprep.subr.bf16.mxu0 %v5842_v48  ;;  %v6361_v54 = vpack.c.bf16 %v5540_v49, %v1221_v53  ;;  %v6412_v39 = vadd.f32 %v312_v7, %v297_v33 }
 0x10c   : > { %5855 = vmatprep.subr.bf16.mxu1 %v6358_v52 }
 0x111   : > { %5565 = vmatmul.mubr.msk.f32.vlgmr.msra.gmra.mrb[16].mxu0 %vm1308_vm2, %v5500_v32  ;;  %v294_v32 = vld [vmem:[%s6869_s2 + $0x20] sm:$0xff] }
 0x112   : > { %5845 = vmatpush3.bf16.msra.mxu0 %v5842_v48  ;;  %v6410_v38 = vadd.f32 %v312_v7, %v294_v32 }
 0x113   : > { %5851 = vmatprep.subr.bf16.mxu0 %v6361_v54 }
 0x1d4   : > { %v5559_v13 = vpop.f32.mrb[10].mxu1 }
 0x1d5   : > { %v1480_v14 = vadd.f32 %v5559_v13, %v6374_v11  ;;  %v1474_v15 = vpop.f32.mrb[11].mxu1 }
 0x1d6   : > { %v1475_v16 = vadd.f32 %v1474_v15, %v6376_v12 }
 0x1d7   : > { %v1667_v17 = vsel %vm1657_vm7, %v1480_v14, -inf }
 0x1d8   : > { %1668 = vmax.xlane.f32.xlu1 %v1667_v17  ;;  %v1664_v18 = vsel %vm1657_vm7, %v1475_v16, -inf }
 0x1d9   : > { %1665 = vmax.xlane.f32.xlu0 %v1664_v18 }
 0x1dc   : > { %v5552_v22 = vpop.f32.mrb[14].mxu0  ;;  %v5573_v23 = vpop.f32.mrb[12].mxu1 }
 0x1dd   : > { %v1393_v24 = vadd.f32 %v5552_v22, %v6388_v21  ;;  %v1387_v26 = vpop.f32.mrb[15].mxu0  ;;  %v1648_v27 = vpop.f32.mrb[13].mxu1  ;;  %v1654_v44 = vadd.f32 %v5573_v23, %v6412_v39 }
 0x1de   : > { %v1388_v28 = vadd.f32 %v1387_v26, %v6391_v25  ;;  %v1649_v46 = vadd.f32 %v1648_v27, %v6415_v42 }
 0x1df   : > { %v1661_v29 = vsel %vm1657_vm7, %v1393_v24, -inf  ;;  %v1679_v48 = vsel %vm1657_vm7, %v1654_v44, -inf }
 0x1e0   : > { %1662 = vmax.xlane.f32.xlu1 %v1661_v29  ;;  %v1658_v36 = vsel %vm1657_vm7, %v1388_v28, -inf  ;;  %v1676_v49 = vsel %vm1657_vm7, %v1649_v46, -inf }
 0x1e4   : > { %v5566_v37 = vpop.f32.mrb[16].mxu0  ;;  %1659 = vmax.xlane.f32.xlu1 %v1658_v36 }
 0x1e5   : > { %v1567_v40 = vadd.f32 %v5566_v37, %v6407_v35  ;;  %v1561_v41 = vpop.f32.mrb[17].mxu0 }
 0x1e6   : > { %v1562_v43 = vadd.f32 %v1561_v41, %v6410_v38 }
 0x1e7   : > { %v1673_v45 = vsel %vm1657_vm7, %v1567_v40, -inf }
 0x1e8   : > { %1674 = vmax.xlane.f32.xlu1 %v1673_v45  ;;  %v1670_v47 = vsel %vm1657_vm7, %v1562_v43, -inf }
 0x1e9   : > { %1671 = vmax.xlane.f32.xlu0 %v1670_v47 }
 0x1ec   : > { %1680 = vmax.xlane.f32.xlu1 %v1679_v48 }
 0x1ed   : > { %1677 = vmax.xlane.f32.xlu0 %v1676_v49 }
 0x265   : > { %v1669_v50 = vpop.xlane.xlu1 %1668 }
 0x266   : > { %v1685_v51 = vsub.f32 %v1480_v14, %v1669_v50  ;;  %v1666_v53 = vpop.xlane.xlu0 %1665 }
 0x267   : > { %v1684_v55 = vsub.f32 %v1475_v16, %v1666_v53 }
 0x268   : > { %v1696_v56 = vmul.f32 1.442695, %v1685_v51 }
 0x269   : > { %v1694_v57 = vmul.f32 1.442695, %v1684_v55 }
 0x26a   : > { %5988 = vpow2.f32 %v1696_v56 }
 0x26b   : > { %5990 = vpow2.f32 %v1694_v57 }
 0x26d   : > { %v1663_v58 = vpop.xlane.xlu1 %1662 }
 0x26e   : > { %v1683_v60 = vsub.f32 %v1393_v24, %v1663_v58 }
 0x270   : > { %v1692_v61 = vmul.f32 1.442695, %v1683_v60 }
 0x271   : > { %v1660_v62 = vpop.xlane.xlu1 %1659 }
 0x272   : > { %5992 = vpow2.f32 %v1692_v61  ;;  %v1682_v63 = vsub.f32 %v1388_v28, %v1660_v62 }
 0x274   : > { %v5989_v0 = vpop.eup %5988  ;;  %v1690_v1 = vmul.f32 1.442695, %v1682_v63 }
 0x275   : > { %v5991_v2 = vpop.eup %5990  ;;  %v1675_v3 = vpop.xlane.xlu1 %1674  ;;  %v1715_v7 = vsel %vm1657_vm7, %v5989_v0, 0.0 }
 0x276   : > { %5994 = vpow2.f32 %v1690_v1  ;;  %v1687_v9 = vsub.f32 %v1567_v40, %v1675_v3  ;;  %v1672_v10 = vpop.xlane.xlu0 %1671  ;;  %1716 = vadd.xlane.f32.xlu1 %v1715_v7  ;;  %v1712_v13 = vsel %vm1657_vm7, %v5991_v2, 0.0  ;;  %v2071_v7 = vld [vmem:[%s6871_s4 + $0x8] sm:$0xff] }
 0x277   : > { %v1686_v14 = vsub.f32 %v1562_v43, %v1672_v10  ;;  %1713 = vadd.xlane.f32.xlu0 %v1712_v13  ;;  %v2073_v10 = vld [vmem:[%s6871_s4 + $0x18] sm:$0xff] }
 0x278   : > { %v1700_v15 = vmul.f32 1.442695, %v1687_v9  ;;  %v2072_v9 = vld [vmem:[%s6871_s4 + $0x10] sm:$0xff] }
 0x279   : > { %v1698_v16 = vmul.f32 1.442695, %v1686_v14  ;;  %v1681_v17 = vpop.xlane.xlu1 %1680 }
 0x27a   : > { %5996 = vpow2.f32 %v1700_v15  ;;  %v1689_v18 = vsub.f32 %v1654_v44, %v1681_v17  ;;  %v1678_v19 = vpop.xlane.xlu0 %1677 }
 0x27b   : > { %5998 = vpow2.f32 %v1698_v16  ;;  %v1688_v20 = vsub.f32 %v1649_v46, %v1678_v19 }
 0x27c   : > { %v5993_v22 = vpop.eup %5992  ;;  %v1704_v23 = vmul.f32 1.442695, %v1689_v18 }
 0x27d   : > { %v1702_v24 = vmul.f32 1.442695, %v1688_v20  ;;  %v1709_v26 = vsel %vm1657_vm7, %v5993_v22, 0.0 }
 0x27e   : > { %6000 = vpow2.f32 %v1704_v23  ;;  %1710 = vadd.xlane.f32.xlu1 %v1709_v26 }
 0x27f   : > { %6002 = vpow2.f32 %v1702_v24 }
 0x280   : > { %v5995_v27 = vpop.eup %5994 }
 0x281   : > { %v1706_v28 = vsel %vm1657_vm7, %v5995_v27, 0.0 }
 0x282   : > { %1707 = vadd.xlane.f32.xlu0 %v1706_v28 }
 0x284   : > { %v5997_v29 = vpop.eup %5996 }
 0x285   : > { %v5999_v31 = vpop.eup %5998  ;;  %v1721_v32 = vsel %vm1657_vm7, %v5997_v29, 0.0 }
 0x286   : > { %1722 = vadd.xlane.f32.xlu1 %v1721_v32  ;;  %v1718_v33 = vsel %vm1657_vm7, %v5999_v31, 0.0 }
 0x287   : > { %1719 = vadd.xlane.f32.xlu0 %v1718_v33 }
 0x288   : > { %v6001_v34 = vpop.eup %6000 }
 0x289   : > { %v6003_v36 = vpop.eup %6002  ;;  %v1727_v37 = vsel %vm1657_vm7, %v6001_v34, 0.0 }
 0x28a   : > { %1728 = vadd.xlane.f32.xlu1 %v1727_v37  ;;  %v1724_v40 = vsel %vm1657_vm7, %v6003_v36, 0.0 }
 0x28b   : > { %1725 = vadd.xlane.f32.xlu0 %v1724_v40 }
 0x303   : > { %v1717_v41 = vpop.xlane.xlu1 %1716 }
 0x304   : > { %6004 = vrcp.f32 %v1717_v41  ;;  %v1714_v43 = vpop.xlane.xlu0 %1713  ;;  %v6471_v41 = vld [vmem:[%s6872_s5 + $0x60] sm:$0xff] }
 0x305   : > { %6006 = vrcp.f32 %v1714_v43 }
 0x30b   : > { %v1711_v44 = vpop.xlane.xlu1 %1710 }
 0x30c   : > { %6008 = vrcp.f32 %v1711_v44 }
 0x30e   : > { %v6005_v45 = vpop.eup %6004 }
 0x30f   : > { %v6007_v46 = vpop.eup %6006  ;;  %v1708_v47 = vpop.xlane.xlu0 %1707  ;;  %v1741_v49 = vmul.f32 %v6005_v45, %v5989_v0 }
 0x310   : > { %6010 = vrcp.f32 %v1708_v47  ;;  %v1740_v48 = vmul.f32 %v6007_v46, %v5991_v2 }
 0x312   : > { %5585 = vmatprep.mubr.msk.f32.mxu1 %vm1657_vm7, %v1740_v48 }
 0x313   : > { %5586 = vmatmul.mubr.msk.f32.vlgmr.msra.gmra.mrb[14].mxu1 %vm1657_vm7, %v1741_v49  ;;  %v1723_v50 = vpop.xlane.xlu1 %1722 }
 0x314   : > { %5857 = vmatpush3.bf16.msra.mxu1 %v6358_v52  ;;  %6012 = vrcp.f32 %v1723_v50  ;;  %v1720_v51 = vpop.xlane.xlu0 %1719 }
 0x315   : > { %6014 = vrcp.f32 %v1720_v51  ;;  %5607 = vmatprep.subr.mxu1 %v2071_v7 }
 0x316   : > { %v6009_v56 = vpop.eup %6008 }
 0x317   : > { %v1729_v53 = vpop.xlane.xlu1 %1728  ;;  %v1739_v60 = vmul.f32 %v6009_v56, %v5993_v22 }
 0x318   : > { %6016 = vrcp.f32 %v1729_v53  ;;  %v1726_v55 = vpop.xlane.xlu0 %1725 }
 0x319   : > { %6018 = vrcp.f32 %v1726_v55 }
 0x31a   : > { %v6011_v57 = vpop.eup %6010 }
 0x31b   : > { %v1738_v58 = vmul.f32 %v6011_v57, %v5995_v27 }
 0x31d   : > { %5578 = vmatprep.mubr.msk.f32.mxu0 %vm1657_vm7, %v1738_v58 }
 0x31e   : > { %v6013_v61 = vpop.eup %6012  ;;  %5579 = vmatmul.mubr.msk.f32.vlgmr.msra.gmra.mrb[18].mxu0 %vm1657_vm7, %v1739_v60 }
 0x31f   : > { %v6015_v62 = vpop.eup %6014  ;;  %5853 = vmatpush3.bf16.msra.mxu0 %v6361_v54  ;;  %v1743_v63 = vmul.f32 %v6013_v61, %v5997_v29  ;;  %v2070_v54 = vld [vmem:[%s6871_s4] sm:$0xff] }
 0x320   : > { %v1742_v52 = vmul.f32 %v6015_v62, %v5999_v31  ;;  %5602 = vmatprep.subr.mxu0 %v2070_v54 }
 0x322   : > { %v6017_v0 = vpop.eup %6016  ;;  %5592 = vmatprep.mubr.msk.f32.mxu0 %vm1657_vm7, %v1742_v52 }
 0x323   : > { %v6019_v1 = vpop.eup %6018  ;;  %5593 = vmatmul.mubr.msk.f32.vlgmr.msra.gmra.mrb[20].mxu0 %vm1657_vm7, %v1743_v63  ;;  %v1745_v3 = vmul.f32 %v6017_v0, %v6001_v34 }
 0x324   : > { %v1744_v2 = vmul.f32 %v6019_v1, %v6003_v36  ;;  %5603 = vmatpush3.msra.mxu0 %v2070_v54  ;;  %v2414_v36 = vsub.s32 1, %v6364_v59 }
 0x325   : > { %5612 = vmatprep.subr.mxu0 %v2072_v9 }
 0x326   : > { %5599 = vmatprep.mubr.msk.f32.mxu1 %vm1657_vm7, %v1744_v2  ;;  %v2415_v47 = vrot.slane %v6471_v41, %v2414_v36 }
 0x327   : > { %5600 = vmatmul.mubr.msk.f32.vlgmr.msra.gmra.mrb[16].mxu1 %vm1657_vm7, %v1745_v3 }
 0x328   : > { %5608 = vmatpush3.msra.mxu1 %v2071_v7 }
 0x329   : > { %5617 = vmatprep.subr.mxu1 %v2073_v10 }
 0x3e6   : > { %v5587_v13 = vpop.f32.mrb[14].mxu1 }
 0x3e7   : > { %v1899_v14 = vpop.f32.mrb[15].mxu1 }
 0x3e8   : > { %5609 = vmatprep.mubr.msk.f32.mxu1 %vm1308_vm2, %v1899_v14  ;;  %v337_v14 = vld [vmem:[%s6872_s5 + $0x18] sm:$0xff] }
 0x3e9   : > { %5610 = vmatmul.mubr.msk.f32.vlgmr.msra.gmra.mrb[18].mxu1 %vm1308_vm2, %v5587_v13  ;;  %v336_v13 = vld [vmem:[%s6872_s5 + $0x10] sm:$0xff] }
 0x3ea   : > { %5618 = vmatpush3.msra.mxu1 %v2073_v10 }
 0x3f1   : > { %v5580_v15 = vpop.f32.mrb[18].mxu0 }
 0x3f2   : > { %v1818_v16 = vpop.f32.mrb[19].mxu0 }
 0x3f3   : > { %5604 = vmatprep.mubr.msk.f32.mxu0 %vm1308_vm2, %v1818_v16  ;;  %v338_v16 = vld [vmem:[%s6872_s5 + $0x20] sm:$0xff] }
 0x3f4   : > { %5605 = vmatmul.mubr.msk.f32.vlgmr.msra.gmra.mrb[22].mxu0 %vm1308_vm2, %v5580_v15  ;;  %v5862_v15 = vpack.c.bf16 %v337_v14, %v336_v13 }
 0x3f5   : > { %5613 = vmatpush3.msra.mxu0 %v2072_v9  ;;  %v335_v9 = vld [vmem:[%s6872_s5 + $0x8] sm:$0xff] }
 0x3f6   : > { %v5594_v17 = vpop.f32.mrb[20].mxu0 }
 0x3f7   : > { %v1980_v18 = vpop.f32.mrb[21].mxu0 }
 0x3f8   : > { %5614 = vmatprep.mubr.msk.f32.mxu0 %vm1308_vm2, %v1980_v18  ;;  %v340_v18 = vld [vmem:[%s6872_s5 + $0x30] sm:$0xff] }
 0x3f9   : > { %5615 = vmatmul.mubr.msk.f32.vlgmr.msra.gmra.mrb[24].mxu0 %vm1308_vm2, %v5594_v17  ;;  %v339_v17 = vld [vmem:[%s6872_s5 + $0x28] sm:$0xff] }
 0x3fa   : > { %v5601_v19 = vpop.f32.mrb[16].mxu1 }
 0x3fb   : > { %v2061_v20 = vpop.f32.mrb[17].mxu1 }
 0x3fc   : > { %5619 = vmatprep.mubr.msk.f32.mxu1 %vm1308_vm2, %v2061_v20  ;;  %v341_v20 = vld [vmem:[%s6872_s5 + $0x38] sm:$0xff] }
 0x3fd   : > { %5620 = vmatmul.mubr.msk.f32.vlgmr.msra.gmra.mrb[20].mxu1 %vm1308_vm2, %v5601_v19  ;;  %v5866_v19 = vpack.c.bf16 %v339_v17, %v338_v16 }
 0x3ff   : > { %5867 = vmatprep.subr.bf16.mxu1 %v5866_v19 }
 0x400   : > { %5869 = vmatpush3.bf16.msra.mxu1 %v5866_v19 }
 0x4bc   : > { %v5611_v22 = vpop.f32.mrb[18].mxu1 }
 0x4bd   : > { %v2227_v23 = vpop.f32.mrb[19].mxu1  ;;  %v2406_v26 = vsel %vm279_vm1, %v5611_v22, 0.0  ;;  %v5870_v22 = vpack.c.bf16 %v341_v20, %v340_v18 }
 0x4be   : > { %v2399_v29 = vsel %vm279_vm1, %v2227_v23, 0.0  ;;  %v342_v23 = vld [vmem:[%s6872_s5 + $0x40] sm:$0xff] }
 0x4bf   : > { %5871 = vmatprep.subr.bf16.mxu1 %v5870_v22 }
 0x4c0   : > { %5873 = vmatpush3.bf16.msra.mxu1 %v5870_v22 }
 0x4c7   : > { %v5606_v24 = vpop.f32.mrb[22].mxu0 }
 0x4c8   : > { %v2405_v27 = vsel %vm279_vm1, %v5606_v24, 0.0  ;;  %v2146_v28 = vpop.f32.mrb[23].mxu0  ;;  %v343_v24 = vld [vmem:[%s6872_s5 + $0x48] sm:$0xff] }
 0x4c9   : > { %v2407_v31 = vadd.f32 %v2406_v26, %v2405_v27  ;;  %v2398_v32 = vsel %vm279_vm1, %v2146_v28, 0.0  ;;  %v5874_v26 = vpack.c.bf16 %v343_v24, %v342_v23 }
 0x4ca   : > { %v2400_v33 = vadd.f32 %v2399_v29, %v2398_v32 }
 0x4cb   : > { %5875 = vmatprep.subr.bf16.mxu1 %v5874_v26 }
 0x4cc   : > { %v5616_v34 = vpop.f32.mrb[24].mxu0  ;;  %5877 = vmatpush3.bf16.msra.mxu1 %v5874_v26  ;;  %v5200_v26 = vld [vmem:[%s6870_s3 + $0x60] sm:$0xff] }
 0x4cd   : > { %v2408_v37 = vsel %vm279_vm1, %v5616_v34, 0.0  ;;  %v2308_v40 = vpop.f32.mrb[25].mxu0  ;;  %v2449_v34 = vsub.s32 2, %v6364_v59 }
 0x4ce   : > { %v2409_v43 = vadd.f32 %v2408_v37, %v2407_v31  ;;  %v2401_v44 = vsel %vm279_vm1, %v2308_v40, 0.0  ;;  %v2455_v37 = vsub.s32 3, %v6364_v59 }
 0x4cf   : > { %v2402_v45 = vadd.f32 %v2401_v44, %v2400_v33  ;;  %v2450_v40 = vrot.slane %v6471_v41, %v2449_v34 }
 0x4d0   : > { %v5621_v46 = vpop.f32.mrb[20].mxu1 }
 0x4d1   : > { %v2410_v48 = vsel %vm279_vm1, %v5621_v46, 0.0  ;;  %v2389_v49 = vpop.f32.mrb[21].mxu1 }
 0x4d2   : > { %v2411_v50 = vadd.f32 %v2410_v48, %v2409_v43  ;;  %v2403_v51 = vsel %vm279_vm1, %v2389_v49, 0.0 }
 0x4d3   : > { %v2404_v53 = vadd.f32 %v2403_v51, %v2402_v45 }
 0x4d4   : > { %v2417_v55 = vadd.f32 %v2415_v47, %v2411_v50 }
 0x4d5   : > { %v2416_v56 = vadd.f32 %v2415_v47, %v2404_v53  ;;  %v2456_v47 = vrot.slane %v6471_v41, %v2455_v37  ;;  %v344_v53 = vld [vmem:[%s6872_s5 + $0x50] sm:$0xff] }
 0x4d6   : > { %v2419_v57 = vadd.f32 %v2417_v55, %v6248_v6  ;;  %v345_v55 = vld [vmem:[%s6872_s5 + $0x58] sm:$0xff] }
 0x4d7   : > { %v2418_v58 = vadd.f32 %v2416_v56, %v6244_v4  ;;  %v334_v4 = vld [vmem:[%s6872_s5] sm:$0xff]  ;;  %v5878_v56 = vpack.c.bf16 %v345_v55, %v344_v53 }
 0x4d8   : > { %v2423_v60 = vsel %vm279_vm1, %v2419_v57, 0.0  ;;  %v5858_v10 = vpack.c.bf16 %v335_v9, %v334_v4 }
 0x4d9   : > { %2424 = vadd.xlane.f32.xlu1 %v2423_v60  ;;  %v2420_v61 = vsel %vm279_vm1, %v2418_v58, 0.0  ;;  %5879 = vmatprep.subr.bf16.mxu1 %v5878_v56 }
 0x4da   : > { %2421 = vadd.xlane.f32.xlu0 %v2420_v61  ;;  %5859 = vmatprep.subr.bf16.mxu0 %v5858_v10 }
 0x4db   : > { %5861 = vmatpush3.bf16.msra.mxu0 %v5858_v10  ;;  %5881 = vmatpush3.bf16.msra.mxu1 %v5878_v56 }
 0x4dc   : > { %5863 = vmatprep.subr.bf16.mxu0 %v5862_v15 }
 0x4df   : > { %5865 = vmatpush3.bf16.msra.mxu0 %v5862_v15 }
 0x4e0   : > { %5652 = vmatprep.subr.msk.mxu0 %vm355_vm0, %v5200_v26 }
 0x566   : > { %v2425_v62 = vpop.xlane.xlu1 %2424 }
 0x567   : > { %v2428_v52 = vmul.f32 0.03125, %v2425_v62  ;;  %v2422_v63 = vpop.xlane.xlu0 %2421 }
 0x568   : > { %v2427_v0 = vmul.f32 0.03125, %v2422_v63 }
 0x569   : > { %v2430_v1 = vsub.f32 %v2419_v57, %v2428_v52  ;;  %v2461_v57 = vsub.s32 0, %v6364_v59 }
 0x56a   : > { %v2429_v2 = vsub.f32 %v2418_v58, %v2427_v0 }
 0x56b   : > { %v2432_v3 = vmul.f32 %v2430_v1, %v2430_v1  ;;  %v2462_v58 = vrot.slane %v6471_v41, %v2461_v57 }
 0x56c   : > { %v2431_v7 = vmul.f32 %v2429_v2, %v2429_v2 }
 0x56d   : > { %v2436_v54 = vsel %vm279_vm1, %v2432_v3, 0.0 }
 0x56e   : > { %2437 = vadd.xlane.f32.xlu1 %v2436_v54  ;;  %v2433_v6 = vsel %vm279_vm1, %v2431_v7, 0.0 }
 0x56f   : > { %2434 = vadd.xlane.f32.xlu0 %v2433_v6 }
 0x5fb   : > { %v2438_v27 = vpop.xlane.xlu1 %2437 }
 0x5fc   : > { %v2440_v28 = vmul.f32 0.03125, %v2438_v27  ;;  %v2435_v29 = vpop.xlane.xlu0 %2434  ;;  %v5203_v27 = vld [vmem:[%s6870_s3 + $0x78] sm:$0xff] }
 0x5fd   : > { %v2439_v31 = vmul.f32 0.03125, %v2435_v29  ;;  %5667 = vmatprep.subr.msk.mxu1 %vm355_vm0, %v5203_v27  ;;  %v5217_v29 = vld [vmem:[%s6870_s3 + $0x88] sm:$0xff] }
 0x5fe   : > { %v2442_v32 = vadd.f32 1e-05, %v2440_v28  ;;  %v5201_v28 = vld [vmem:[%s6870_s3 + $0x68] sm:$0xff] }
 0x5ff   : > { %v2441_v33 = vadd.f32 1e-05, %v2439_v31 }
 0x600   : > { %6020 = vrsqrt.f32 %v2442_v32 }
 0x601   : > { %6022 = vrsqrt.f32 %v2441_v33 }
 0x60a   : > { %v6021_v43 = vpop.eup %6020 }
 0x60b   : > { %v6023_v44 = vpop.eup %6022  ;;  %v2446_v45 = vmul.f32 %v6021_v43, %v2430_v1  ;;  %v2548_v1 = vsub.s32 4, %v6364_v59 }
 0x60c   : > { %v2445_v46 = vmul.f32 %v6023_v44, %v2429_v2 }
 0x60d   : > { %v2452_v48 = vmul.f32 %v2450_v40, %v2446_v45  ;;  %v2549_v2 = vrot.slane %v6471_v41, %v2548_v1  ;;  %v2662_v45 = vsub.s32 5, %v6364_v59 }
 0x60e   : > { %v2451_v49 = vmul.f32 %v2450_v40, %v2445_v46  ;;  %v2668_v46 = vsub.s32 6, %v6364_v59 }
 0x60f   : > { %v2458_v51 = vadd.f32 %v2456_v47, %v2452_v48 }
 0x610   : > { %v2457_v50 = vadd.f32 %v2456_v47, %v2451_v49  ;;  %v2663_v47 = vrot.slane %v6471_v41, %v2662_v45 }
 0x612   : > { %5630 = vmatprep.mubr.msk.f32.mxu0 %vm279_vm1, %v2457_v50 }
 0x613   : > { %5631 = vmatmul.mubr.msk.f32.vlgmr.msra.gmra.mrb[26].mxu0 %vm279_vm1, %v2458_v51 }
 0x614   : > { %5653 = vmatpush3.xpose.msk.msra.mxu0 %vm355_vm0, %v5200_v26 }
 0x615   : > { %5657 = vmatprep.subr.msk.mxu0 %vm355_vm0, %v5201_v28 }
 0x6e6   : > { %v5632_v60 = vpop.f32.mrb[26].mxu0 }
 0x6e7   : > { %v2541_v61 = vadd.f32 %v5632_v60, %v2462_v58  ;;  %v2535_v62 = vpop.f32.mrb[27].mxu0 }
 0x6e8   : > { %v2536_v52 = vadd.f32 %v2535_v62, %v2462_v58 }
 0x6e9   : > { %v2545_v0 = vmax.f32 %v2541_v61, 0.0 }
 0x6ea   : > { %v2544_v63 = vmax.f32 %v2536_v52, 0.0 }
 0x6ec   : > { %5649 = vmatprep.mubr.msk.f32.mxu1 %vm2550_vm8, %v2544_v63 }
 0x6ed   : > { %5650 = vmatmul.mubr.msk.f32.vlgmr.msra.gmra.mrb[22].mxu1 %vm2550_vm8, %v2545_v0  ;;  %v5233_v0 = vld [vmem:[%s6870_s3 + $0xa8] sm:$0xff] }
 0x6ee   : > { %5668 = vmatpush3.xpose.msk.msra.mxu1 %vm355_vm0, %v5203_v27 }
 0x6ef   : > { %5677 = vmatprep.subr.msk.mxu1 %vm355_vm0, %v5217_v29 }
 0x7c0   : > { %v5651_v3 = vpop.f32.mrb[22].mxu1 }
 0x7c1   : > { %v2629_v7 = vadd.f32 %v5651_v3, %v2549_v2  ;;  %v2623_v54 = vpop.f32.mrb[23].mxu1  ;;  %v5235_v3 = vld [vmem:[%s6870_s3 + $0xb8] sm:$0xff] }
 0x7c2   : > { %v2624_v6 = vadd.f32 %v2623_v54, %v2549_v2  ;;  %v5218_v2 = vld [vmem:[%s6870_s3 + $0x90] sm:$0xff] }
 0x7c3   : > { %v2633_v4 = vadd.f32 %v2629_v7, %v2458_v51  ;;  %v5232_v7 = vld [vmem:[%s6870_s3 + $0xa0] sm:$0xff]  ;;  %v5234_v54 = vld [vmem:[%s6870_s3 + $0xb0] sm:$0xff] }
 0x7c4   : > { %v2632_v9 = vadd.f32 %v2624_v6, %v2457_v50  ;;  %v2669_v50 = vrot.slane %v6471_v41, %v2668_v46  ;;  %v5202_v41 = vld [vmem:[%s6870_s3 + $0x70] sm:$0xff] }
 0x7c5   : > { %v2637_v10 = vsel %vm279_vm1, %v2633_v4, 0.0 }
 0x7c6   : > { %2638 = vadd.xlane.f32.xlu1 %v2637_v10  ;;  %v2634_v13 = vsel %vm279_vm1, %v2632_v9, 0.0 }
 0x7c7   : > { %2635 = vadd.xlane.f32.xlu0 %v2634_v13 }
 0x853   : > { %v2639_v14 = vpop.xlane.xlu1 %2638 }
 0x854   : > { %v2641_v15 = vmul.f32 0.03125, %v2639_v14  ;;  %v2636_v16 = vpop.xlane.xlu0 %2635 }
 0x855   : > { %v2640_v17 = vmul.f32 0.03125, %v2636_v16 }
 0x856   : > { %v2643_v18 = vsub.f32 %v2633_v4, %v2641_v15 }
 0x857   : > { %v2642_v19 = vsub.f32 %v2632_v9, %v2640_v17 }
 0x858   : > { %v2645_v20 = vmul.f32 %v2643_v18, %v2643_v18 }
 0x859   : > { %v2644_v22 = vmul.f32 %v2642_v19, %v2642_v19 }
 0x85a   : > { %v2649_v23 = vsel %vm279_vm1, %v2645_v20, 0.0 }
 0x85b   : > { %2650 = vadd.xlane.f32.xlu1 %v2649_v23  ;;  %v2646_v24 = vsel %vm279_vm1, %v2644_v22, 0.0 }
 0x85c   : > { %2647 = vadd.xlane.f32.xlu0 %v2646_v24 }
 0x8e8   : > { %v2651_v31 = vpop.xlane.xlu1 %2650 }
 0x8e9   : > { %v2653_v32 = vmul.f32 0.03125, %v2651_v31  ;;  %v2648_v33 = vpop.xlane.xlu0 %2647 }
 0x8ea   : > { %v2652_v40 = vmul.f32 0.03125, %v2648_v33 }
 0x8eb   : > { %v2655_v43 = vadd.f32 1e-05, %v2653_v32 }
 0x8ec   : > { %v2654_v44 = vadd.f32 1e-05, %v2652_v40 }
 0x8ed   : > { %6024 = vrsqrt.f32 %v2655_v43 }
 0x8ee   : > { %6026 = vrsqrt.f32 %v2654_v44 }
 0x8f7   : > { %v6025_v48 = vpop.eup %6024 }
 0x8f8   : > { %v6027_v49 = vpop.eup %6026  ;;  %v2659_v51 = vmul.f32 %v6025_v48, %v2643_v18 }
 0x8f9   : > { %v2658_v53 = vmul.f32 %v6027_v49, %v2642_v19 }
 0x8fa   : > { %v2665_v55 = vmul.f32 %v2663_v47, %v2659_v51 }
 0x8fb   : > { %v2664_v56 = vmul.f32 %v2663_v47, %v2658_v53 }
 0x8fc   : > { %v6571_v58 = vadd.f32 %v2669_v50, %v2665_v55 }
 0x8fd   : > { %v6573_v60 = vadd.f32 %v2669_v50, %v2664_v56 }
 0x8fe   : > { %v2687_v61 = vadd.f32 %v6571_v58, %v6252_v8  ;;  %v5216_v8 = vld [vmem:[%s6870_s3 + $0x80] sm:$0xff] }
 0x8ff   : > { %v2686_v62 = vadd.f32 %v6573_v60, %v6246_v5  ;;  %v5219_v5 = vld [vmem:[%s6870_s3 + $0x98] sm:$0xff] }
 0x900   : > { %v2689_v63 = vsel %vm279_vm1, %v2687_v61, 1.0 }
 0x901   : > { %v2688_v52 = vsel %vm279_vm1, %v2686_v62, 1.0 }
 0x902   : > { %5654 = vmatprep.mubr.msk.f32.mxu0 %vm355_vm0, %v2688_v52  ;;  %5669 = vmatprep.mubr.msk.f32.mxu1 %vm355_vm0, %v2688_v52 }
 0x903   : > { %5655 = vmatmul.mubr.msk.f32.vlgmr.msra.gmra.mrb[28].mxu0 %vm355_vm0, %v2689_v63  ;;  %5670 = vmatmul.mubr.msk.f32.vlgmr.msra.gmra.mrb[24].mxu1 %vm355_vm0, %v2689_v63 }
 0x904   : > { %5658 = vmatpush3.xpose.msk.msra.mxu0 %vm355_vm0, %v5201_v28  ;;  %5659 = vmatprep.mubr.msk.f32.mxu0 %vm355_vm0, %v2688_v52 }
 0x905   : > { %5678 = vmatpush3.xpose.msk.msra.mxu1 %vm355_vm0, %v5217_v29  ;;  %5679 = vmatprep.mubr.msk.f32.mxu1 %vm355_vm0, %v2688_v52 }
 0x906   : > { %5662 = vmatprep.subr.msk.mxu0 %vm355_vm0, %v5202_v41  ;;  %5687 = vmatprep.subr.msk.mxu1 %vm355_vm0, %v5219_v5 }
 0x907   : > { %5660 = vmatmul.mubr.msk.f32.vlgmr.msra.gmra.mrb[30].mxu0 %vm355_vm0, %v2689_v63 }
 0x908   : > { %5663 = vmatpush3.xpose.msk.msra.mxu0 %vm355_vm0, %v5202_v41  ;;  %5680 = vmatmul.mubr.msk.f32.vlgmr.msra.gmra.mrb[26].mxu1 %vm355_vm0, %v2689_v63 }
 0x909   : > { %5664 = vmatprep.mubr.msk.f32.mxu0 %vm355_vm0, %v2688_v52  ;;  %5688 = vmatpush3.xpose.msk.msra.mxu1 %vm355_vm0, %v5219_v5 }
 0x90a   : > { %5689 = vmatprep.mubr.msk.f32.mxu1 %vm355_vm0, %v2688_v52  ;;  %5672 = vmatprep.subr.msk.mxu0 %vm355_vm0, %v5216_v8 }
 0x90b   : > { %5665 = vmatmul.mubr.msk.f32.vlgmr.msra.gmra.mrb[32].mxu0 %vm355_vm0, %v2689_v63  ;;  %5697 = vmatprep.subr.msk.mxu1 %vm355_vm0, %v5233_v0 }
 0x90c   : > { %5673 = vmatpush3.xpose.msk.msra.mxu0 %vm355_vm0, %v5216_v8  ;;  %5690 = vmatmul.mubr.msk.f32.vlgmr.msra.gmra.mrb[28].mxu1 %vm355_vm0, %v2689_v63 }
 0x90d   : > { %5674 = vmatprep.mubr.msk.f32.mxu0 %vm355_vm0, %v2688_v52  ;;  %5698 = vmatpush3.xpose.msk.msra.mxu1 %vm355_vm0, %v5233_v0 }
 0x90e   : > { %5699 = vmatprep.mubr.msk.f32.mxu1 %vm355_vm0, %v2688_v52  ;;  %5682 = vmatprep.subr.msk.mxu0 %vm355_vm0, %v5218_v2 }
 0x90f   : > { %5675 = vmatmul.mubr.msk.f32.vlgmr.msra.gmra.mrb[34].mxu0 %vm355_vm0, %v2689_v63  ;;  %5707 = vmatprep.subr.msk.mxu1 %vm355_vm0, %v5235_v3 }
 0x910   : > { %5700 = vmatmul.mubr.msk.f32.vlgmr.msra.gmra.mrb[30].mxu1 %vm355_vm0, %v2689_v63  ;;  %5683 = vmatpush3.xpose.msk.msra.mxu0 %vm355_vm0, %v5218_v2 }
 0x911   : > { %5684 = vmatprep.mubr.msk.f32.mxu0 %vm355_vm0, %v2688_v52  ;;  %5708 = vmatpush3.xpose.msk.msra.mxu1 %vm355_vm0, %v5235_v3 }
 0x912   : > { %5709 = vmatprep.mubr.msk.f32.mxu1 %vm355_vm0, %v2688_v52  ;;  %5692 = vmatprep.subr.msk.mxu0 %vm355_vm0, %v5232_v7 }
 0x913   : > { %5685 = vmatmul.mubr.msk.f32.vlgmr.msra.gmra.mrb[36].mxu0 %vm355_vm0, %v2689_v63 }
 0x914   : > { %5710 = vmatmul.mubr.msk.f32.vlgmr.msra.gmra.mrb[32].mxu1 %vm355_vm0, %v2689_v63  ;;  %5693 = vmatpush3.xpose.msk.msra.mxu0 %vm355_vm0, %v5232_v7 }
 0x915   : > { %5694 = vmatprep.mubr.msk.f32.mxu0 %vm355_vm0, %v2688_v52  ;;  %5702 = vmatprep.subr.msk.mxu0 %vm355_vm0, %v5234_v54 }
 0x917   : > { %5695 = vmatmul.mubr.msk.f32.vlgmr.msra.gmra.mrb[38].mxu0 %vm355_vm0, %v2689_v63 }
 0x918   : > { %5703 = vmatpush3.xpose.msk.msra.mxu0 %vm355_vm0, %v5234_v54  ;;  %5704 = vmatprep.mubr.msk.f32.mxu0 %vm355_vm0, %v2688_v52 }
 0x91b   : > { %5705 = vmatmul.mubr.msk.f32.vlgmr.msra.gmra.mrb[40].mxu0 %vm355_vm0, %v2689_v63 }
 0x9d6   : > { %v5656_v6 = vpop.f32.mrb[28].mxu0  ;;  %v5671_v4 = vpop.f32.mrb[24].mxu1 }
 0x9d7   : > { %v2770_v9 = vpop.f32.mrb[29].mxu0  ;;  %v3004_v10 = vpop.f32.mrb[25].mxu1 }
 0x9d8   : > { %5716 = vmatprep.mubr.msk.f32.mxu0 %vm1308_vm2, %v2770_v9 }
 0x9da   : > { %v5661_v13 = vpop.f32.mrb[30].mxu0 }
 0x9db   : > { %v5681_v14 = vpop.f32.mrb[26].mxu1  ;;  %v2848_v15 = vpop.f32.mrb[31].mxu0 }
 0x9dc   : > { %v3165_v16 = vpop.f32.mrb[27].mxu1  ;;  %5723 = vmatprep.mubr.msk.f32.mxu1 %vm1308_vm2, %v2848_v15 }
 0x9dd   : > { %v5888_v17 = vpack.c.bf16 %v5681_v14, %v3165_v16 }
 0x9de   : > { %v5666_v18 = vpop.f32.mrb[32].mxu0 }
 0x9df   : > { %v5691_v19 = vpop.f32.mrb[28].mxu1  ;;  %5890 = vmatprep.subr.msk.bf16.mxu1 %vm6331_vm3, %v5888_v17  ;;  %v2926_v20 = vpop.f32.mrb[33].mxu0 }
 0x9e0   : > { %v3321_v22 = vpop.f32.mrb[29].mxu1  ;;  %5893 = vmatpush3.bf16.xpose.msk.msra.mxu1 %vm6331_vm3, %v5888_v17 }
 0x9e1   : > { %v5900_v23 = vpack.c.bf16 %v5691_v19, %v3321_v22 }
 0x9e2   : > { %v5676_v24 = vpop.f32.mrb[34].mxu0 }
 0x9e3   : > { %v5701_v26 = vpop.f32.mrb[30].mxu1  ;;  %5902 = vmatprep.subr.msk.bf16.mxu1 %vm6331_vm3, %v5900_v23  ;;  %v3087_v27 = vpop.f32.mrb[35].mxu0 }
 0x9e4   : > { %v5882_v28 = vpack.c.bf16 %v5676_v24, %v3087_v27  ;;  %v3482_v29 = vpop.f32.mrb[31].mxu1 }
 0x9e5   : > { %v5910_v31 = vpack.c.bf16 %v5701_v26, %v3482_v29 }
 0x9e6   : > { %v5686_v32 = vpop.f32.mrb[36].mxu0  ;;  %5884 = vmatprep.subr.msk.bf16.mxu0 %vm6331_vm3, %v5882_v28 }
 0x9e7   : > { %v5711_v33 = vpop.f32.mrb[32].mxu1  ;;  %5724 = vmatmul.mubr.msk.f32.vlgmr.msra.gmra.mrb[34].mxu1 %vm1308_vm2, %v5661_v13  ;;  %v3243_v40 = vpop.f32.mrb[37].mxu0  ;;  %5887 = vmatpush3.bf16.xpose.msk.msra.mxu0 %vm6331_vm3, %v5882_v28 }
 0x9e8   : > { %v5894_v43 = vpack.c.bf16 %v5686_v32, %v3243_v40  ;;  %v3638_v44 = vpop.f32.mrb[33].mxu1  ;;  %5905 = vmatpush3.bf16.xpose.msk.msra.mxu1 %vm6331_vm3, %v5900_v23  ;;  %5737 = vmatprep.mubr.msk.f32.mxu1 %vm1308_vm2, %v3004_v10 }
 0x9e9   : > { %v6663_v47 = vpack.c.bf16 %v5711_v33, %v3638_v44  ;;  %5911 = vmatprep.subr.bf16.mxu1 %v5910_v31 }
 0x9ea   : > { %v5696_v48 = vpop.f32.mrb[38].mxu0  ;;  %5896 = vmatprep.subr.msk.bf16.mxu0 %vm6331_vm3, %v5894_v43 }
 0x9eb   : > { %v3404_v49 = vpop.f32.mrb[39].mxu0 }
 0x9ec   : > { %v5906_v50 = vpack.c.bf16 %v5696_v48, %v3404_v49 }
 0x9ee   : > { %v5706_v51 = vpop.f32.mrb[40].mxu0  ;;  %5717 = vmatmul.mubr.msk.f32.vlgmr.msra.gmra.mrb[42].mxu0 %vm1308_vm2, %v5656_v6 }
 0x9ef   : > { %5738 = vmatmul.mubr.msk.f32.vlgmr.msra.gmra.mrb[36].mxu1 %vm1308_vm2, %v5671_v4  ;;  %v3560_v53 = vpop.f32.mrb[41].mxu0  ;;  %5899 = vmatpush3.bf16.xpose.msk.msra.mxu0 %vm6331_vm3, %v5894_v43 }
 0x9f0   : > { %v6671_v55 = vpack.c.bf16 %v5706_v51, %v3560_v53  ;;  %5730 = vmatprep.mubr.msk.f32.mxu0 %vm1308_vm2, %v2926_v20  ;;  %5913 = vmatpush3.bf16.msra.mxu1 %v5910_v31 }
 0x9f1   : > { %5907 = vmatprep.subr.bf16.mxu0 %v5906_v50  ;;  %5919 = vmatprep.subr.bf16.mxu1 %v6663_v47 }
 0x9f6   : > { %5731 = vmatmul.mubr.msk.f32.vlgmr.msra.gmra.mrb[44].mxu0 %vm1308_vm2, %v5666_v18 }
 0x9f7   : > { %5909 = vmatpush3.bf16.msra.mxu0 %v5906_v50 }
 0x9f8   : > { %5915 = vmatprep.subr.bf16.mxu0 %v6671_v55 }
 0xaba   : > { %v5725_v56 = vpop.f32.mrb[34].mxu1 }
 0xabb   : > { %v3818_v61 = vadd.f32 %v5725_v56, %v6374_v11  ;;  %v3812_v62 = vpop.f32.mrb[35].mxu1 }
 0xabc   : > { %v3813_v30 = vadd.f32 %v3812_v62, %v6376_v12 }
 0xabd   : > { %v4004_v52 = vsel %vm1657_vm7, %v3818_v61, -inf }
 0xabe   : > { %4005 = vmax.xlane.f32.xlu1 %v4004_v52  ;;  %v4001_v63 = vsel %vm1657_vm7, %v3813_v30, -inf }
 0xabf   : > { %4002 = vmax.xlane.f32.xlu0 %v4001_v63 }
 0xac1   : > { %v5718_v41 = vpop.f32.mrb[42].mxu0 }
 0xac2   : > { %v3731_v5 = vadd.f32 %v5718_v41, %v6388_v21  ;;  %v5739_v8 = vpop.f32.mrb[36].mxu1  ;;  %v3725_v0 = vpop.f32.mrb[43].mxu0 }
 0xac3   : > { %v3726_v2 = vadd.f32 %v3725_v0, %v6391_v25  ;;  %v3986_v3 = vpop.f32.mrb[37].mxu1  ;;  %v3992_v9 = vadd.f32 %v5739_v8, %v6412_v39 }
 0xac4   : > { %v3998_v7 = vsel %vm1657_vm7, %v3731_v5, -inf  ;;  %v3987_v10 = vadd.f32 %v3986_v3, %v6415_v42 }
 0xac5   : > { %3999 = vmax.xlane.f32.xlu1 %v3998_v7  ;;  %v3995_v11 = vsel %vm1657_vm7, %v3726_v2, -inf  ;;  %v4016_v13 = vsel %vm1657_vm7, %v3992_v9, -inf }
 0xac6   : > { %3996 = vmax.xlane.f32.xlu0 %v3995_v11  ;;  %v4013_v14 = vsel %vm1657_vm7, %v3987_v10, -inf }
 0xac9   : > { %v5732_v12 = vpop.f32.mrb[44].mxu0 }
 0xaca   : > { %v3905_v54 = vadd.f32 %v5732_v12, %v6407_v35  ;;  %v3899_v6 = vpop.f32.mrb[45].mxu0 }
 0xacb   : > { %v3900_v4 = vadd.f32 %v3899_v6, %v6410_v38 }
 0xacc   : > { %v4010_v21 = vsel %vm1657_vm7, %v3905_v54, -inf }
 0xacd   : > { %4011 = vmax.xlane.f32.xlu1 %v4010_v21  ;;  %v4007_v25 = vsel %vm1657_vm7, %v3900_v4, -inf }
 0xace   : > { %4008 = vmax.xlane.f32.xlu0 %v4007_v25 }
 0xad1   : > { %4017 = vmax.xlane.f32.xlu1 %v4016_v13 }
 0xad2   : > { %4014 = vmax.xlane.f32.xlu0 %v4013_v14 }
 0xb4b   : > { %v4006_v35 = vpop.xlane.xlu1 %4005 }
 0xb4c   : > { %v4022_v15 = vsub.f32 %v3818_v61, %v4006_v35  ;;  %v4003_v16 = vpop.xlane.xlu0 %4002 }
 0xb4d   : > { %v4021_v38 = vsub.f32 %v3813_v30, %v4003_v16 }
 0xb4e   : > { %v4033_v17 = vmul.f32 1.442695, %v4022_v15 }
 0xb4f   : > { %v4031_v39 = vmul.f32 1.442695, %v4021_v38 }
 0xb50   : > { %6028 = vpow2.f32 %v4033_v17 }
 0xb51   : > { %6030 = vpow2.f32 %v4031_v39 }
 0xb52   : > { %v4000_v18 = vpop.xlane.xlu1 %3999 }
 0xb53   : > { %v4020_v42 = vsub.f32 %v3731_v5, %v4000_v18  ;;  %v3997_v19 = vpop.xlane.xlu0 %3996 }
 0xb54   : > { %v4019_v20 = vsub.f32 %v3726_v2, %v3997_v19 }
 0xb55   : > { %v4029_v22 = vmul.f32 1.442695, %v4020_v42 }
 0xb56   : > { %v4027_v23 = vmul.f32 1.442695, %v4019_v20 }
 0xb57   : > { %6032 = vpow2.f32 %v4029_v22 }
 0xb58   : > { %6034 = vpow2.f32 %v4027_v23  ;;  %v5272_v23 = vld [vmem:[%s6871_s4 + $0x20] sm:$0xff] }
 0xb5a   : > { %v6029_v24 = vpop.eup %6028  ;;  %v4012_v26 = vpop.xlane.xlu1 %4011 }
 0xb5b   : > { %v6031_v27 = vpop.eup %6030  ;;  %v4024_v28 = vsub.f32 %v3905_v54, %v4012_v26  ;;  %v4052_v29 = vsel %vm1657_vm7, %v6029_v24, 0.0  ;;  %v4009_v31 = vpop.xlane.xlu0 %4008  ;;  %v5275_v26 = vld [vmem:[%s6871_s4 + $0x38] sm:$0xff] }
 0xb5c   : > { %4053 = vadd.xlane.f32.xlu1 %v4052_v29  ;;  %v4023_v32 = vsub.f32 %v3900_v4, %v4009_v31  ;;  %v4049_v33 = vsel %vm1657_vm7, %v6031_v27, 0.0 }
 0xb5d   : > { %v4037_v40 = vmul.f32 1.442695, %v4024_v28  ;;  %4050 = vadd.xlane.f32.xlu0 %v4049_v33 }
 0xb5e   : > { %v4035_v43 = vmul.f32 1.442695, %v4023_v32  ;;  %v4018_v44 = vpop.xlane.xlu1 %4017 }
 0xb5f   : > { %6036 = vpow2.f32 %v4037_v40  ;;  %v4026_v48 = vsub.f32 %v3992_v9, %v4018_v44  ;;  %v4015_v49 = vpop.xlane.xlu0 %4014 }
 0xb60   : > { %6038 = vpow2.f32 %v4035_v43  ;;  %v4025_v50 = vsub.f32 %v3987_v10, %v4015_v49 }
 0xb61   : > { %v6033_v51 = vpop.eup %6032  ;;  %v4041_v53 = vmul.f32 1.442695, %v4026_v48 }
 0xb62   : > { %v6035_v56 = vpop.eup %6034  ;;  %v4039_v61 = vmul.f32 1.442695, %v4025_v50  ;;  %v4046_v62 = vsel %vm1657_vm7, %v6033_v51, 0.0 }
 0xb63   : > { %6040 = vpow2.f32 %v4041_v53  ;;  %4047 = vadd.xlane.f32.xlu1 %v4046_v62  ;;  %v4043_v30 = vsel %vm1657_vm7, %v6035_v56, 0.0 }
 0xb64   : > { %6042 = vpow2.f32 %v4039_v61  ;;  %4044 = vadd.xlane.f32.xlu0 %v4043_v30 }
 0xb69   : > { %v6037_v52 = vpop.eup %6036 }
 0xb6a   : > { %v6039_v63 = vpop.eup %6038  ;;  %v4058_v41 = vsel %vm1657_vm7, %v6037_v52, 0.0 }
 0xb6b   : > { %4059 = vadd.xlane.f32.xlu1 %v4058_v41  ;;  %v4055_v5 = vsel %vm1657_vm7, %v6039_v63, 0.0 }
 0xb6c   : > { %4056 = vadd.xlane.f32.xlu0 %v4055_v5  ;;  %v6739_v5 = vld [vmem:[%s6872_s5 + $0xc8] sm:$0xff] }
 0xb6d   : > { %v6041_v8 = vpop.eup %6040 }
 0xb6e   : > { %v6043_v0 = vpop.eup %6042  ;;  %v4064_v2 = vsel %vm1657_vm7, %v6041_v8, 0.0 }
 0xb6f   : > { %4065 = vadd.xlane.f32.xlu1 %v4064_v2  ;;  %v4061_v3 = vsel %vm1657_vm7, %v6043_v0, 0.0 }
 0xb70   : > { %4062 = vadd.xlane.f32.xlu0 %v4061_v3 }
 0xbe9   : > { %v4054_v7 = vpop.xlane.xlu1 %4053 }
 0xbea   : > { %6044 = vrcp.f32 %v4054_v7  ;;  %v4051_v11 = vpop.xlane.xlu0 %4050  ;;  %v4753_v7 = vrot.slane %v6739_v5, %v2414_v36 }
 0xbeb   : > { %6046 = vrcp.f32 %v4051_v11 }
 0xbf0   : > { %v4048_v12 = vpop.xlane.xlu1 %4047 }
 0xbf1   : > { %6048 = vrcp.f32 %v4048_v12  ;;  %v4045_v54 = vpop.xlane.xlu0 %4044 }
 0xbf2   : > { %6050 = vrcp.f32 %v4045_v54 }
 0xbf4   : > { %v6045_v6 = vpop.eup %6044 }
 0xbf5   : > { %v6047_v4 = vpop.eup %6046  ;;  %v4078_v21 = vmul.f32 %v6045_v6, %v6029_v24  ;;  %v5274_v24 = vld [vmem:[%s6871_s4 + $0x30] sm:$0xff] }
 0xbf6   : > { %v4077_v9 = vmul.f32 %v6047_v4, %v6031_v27 }
 0xbf8   : > { %5751 = vmatprep.mubr.msk.f32.mxu1 %vm1657_vm7, %v4077_v9  ;;  %v4060_v10 = vpop.xlane.xlu1 %4059 }
 0xbf9   : > { %6052 = vrcp.f32 %v4060_v10  ;;  %5752 = vmatmul.mubr.msk.f32.vlgmr.msra.gmra.mrb[38].mxu1 %vm1657_vm7, %v4078_v21  ;;  %v4057_v25 = vpop.xlane.xlu0 %4056 }
 0xbfa   : > { %5921 = vmatpush3.bf16.msra.mxu1 %v6663_v47  ;;  %6054 = vrcp.f32 %v4057_v25 }
 0xbfb   : > { %v6049_v13 = vpop.eup %6048 }
 0xbfc   : > { %v6051_v14 = vpop.eup %6050  ;;  %v4066_v35 = vpop.xlane.xlu1 %4065  ;;  %v4076_v38 = vmul.f32 %v6049_v13, %v6033_v51 }
 0xbfd   : > { %6056 = vrcp.f32 %v4066_v35  ;;  %v4063_v15 = vpop.xlane.xlu0 %4062  ;;  %v4075_v16 = vmul.f32 %v6051_v14, %v6035_v56 }
 0xbfe   : > { %6058 = vrcp.f32 %v4063_v15 }
 0xbff   : > { %5744 = vmatprep.mubr.msk.f32.mxu0 %vm1657_vm7, %v4075_v16 }
 0xc00   : > { %5745 = vmatmul.mubr.msk.f32.vlgmr.msra.gmra.mrb[46].mxu0 %vm1657_vm7, %v4076_v38 }
 0xc01   : > { %5917 = vmatpush3.bf16.msra.mxu0 %v6671_v55  ;;  %v5273_v55 = vld [vmem:[%s6871_s4 + $0x28] sm:$0xff] }
 0xc02   : > { %5773 = vmatprep.subr.mxu1 %v5273_v55  ;;  %5768 = vmatprep.subr.mxu0 %v5272_v23 }
 0xc03   : > { %v6053_v17 = vpop.eup %6052 }
 0xc04   : > { %v6055_v39 = vpop.eup %6054  ;;  %v4080_v42 = vmul.f32 %v6053_v17, %v6037_v52 }
 0xc05   : > { %v4079_v18 = vmul.f32 %v6055_v39, %v6039_v63 }
 0xc07   : > { %v6057_v47 = vpop.eup %6056  ;;  %5758 = vmatprep.mubr.msk.f32.mxu0 %vm1657_vm7, %v4079_v18 }
 0xc08   : > { %v6059_v19 = vpop.eup %6058  ;;  %5759 = vmatmul.mubr.msk.f32.vlgmr.msra.gmra.mrb[48].mxu0 %vm1657_vm7, %v4080_v42  ;;  %v4082_v22 = vmul.f32 %v6057_v47, %v6041_v8  ;;  %v5188_v47 = vld [vmem:[%s6872_s5 + $0x70] sm:$0xff] }
 0xc09   : > { %v4081_v20 = vmul.f32 %v6059_v19, %v6043_v0  ;;  %5769 = vmatpush3.msra.mxu0 %v5272_v23  ;;  %v5191_v23 = vld [vmem:[%s6872_s5 + $0x88] sm:$0xff] }
 0xc0a   : > { %5778 = vmatprep.subr.mxu0 %v5274_v24 }
 0xc0b   : > { %5765 = vmatprep.mubr.msk.f32.mxu1 %vm1657_vm7, %v4081_v20  ;;  %v5189_v20 = vld [vmem:[%s6872_s5 + $0x78] sm:$0xff] }
 0xc0c   : > { %5766 = vmatmul.mubr.msk.f32.vlgmr.msra.gmra.mrb[40].mxu1 %vm1657_vm7, %v4082_v22  ;;  %v5190_v22 = vld [vmem:[%s6872_s5 + $0x80] sm:$0xff] }
 0xc0d   : > { %5774 = vmatpush3.msra.mxu1 %v5273_v55  ;;  %v5926_v55 = vpack.c.bf16 %v5190_v22, %v5189_v20 }
 0xc0e   : > { %5783 = vmatprep.subr.mxu1 %v5275_v26 }
 0xccc   : > { %v5753_v27 = vpop.f32.mrb[38].mxu1 }
 0xccd   : > { %v4236_v28 = vpop.f32.mrb[39].mxu1 }
 0xcce   : > { %5775 = vmatprep.mubr.msk.f32.mxu1 %vm1308_vm2, %v4236_v28  ;;  %v5194_v28 = vld [vmem:[%s6872_s5 + $0xa0] sm:$0xff] }
 0xccf   : > { %5776 = vmatmul.mubr.msk.f32.vlgmr.msra.gmra.mrb[42].mxu1 %vm1308_vm2, %v5753_v27 }
 0xcd0   : > { %5784 = vmatpush3.msra.mxu1 %v5275_v26  ;;  %v5193_v26 = vld [vmem:[%s6872_s5 + $0x98] sm:$0xff] }
 0xcd3   : > { %v5746_v29 = vpop.f32.mrb[46].mxu0 }
 0xcd4   : > { %v4155_v31 = vpop.f32.mrb[47].mxu0 }
 0xcd5   : > { %5770 = vmatprep.mubr.msk.f32.mxu0 %vm1308_vm2, %v4155_v31  ;;  %v5195_v31 = vld [vmem:[%s6872_s5 + $0xa8] sm:$0xff] }
 0xcd6   : > { %5771 = vmatmul.mubr.msk.f32.vlgmr.msra.gmra.mrb[50].mxu0 %vm1308_vm2, %v5746_v29  ;;  %v5934_v29 = vpack.c.bf16 %v5194_v28, %v5193_v26 }
 0xcd7   : > { %5779 = vmatpush3.msra.mxu0 %v5274_v24  ;;  %v5192_v24 = vld [vmem:[%s6872_s5 + $0x90] sm:$0xff] }
 0xcd8   : > { %v5930_v27 = vpack.c.bf16 %v5192_v24, %v5191_v23  ;;  %v4999_v23 = vrot.slane %v6739_v5, %v2662_v45 }
 0xcda   : > { %5931 = vmatprep.subr.bf16.mxu1 %v5930_v27 }
 0xcdb   : > { %v5760_v32 = vpop.f32.mrb[48].mxu0 }
 0xcdc   : > { %v4317_v33 = vpop.f32.mrb[49].mxu0 }
 0xcdd   : > { %5780 = vmatprep.mubr.msk.f32.mxu0 %vm1308_vm2, %v4317_v33 }
 0xcde   : > { %5781 = vmatmul.mubr.msk.f32.vlgmr.msra.gmra.mrb[52].mxu0 %vm1308_vm2, %v5760_v32  ;;  %v5196_v32 = vld [vmem:[%s6872_s5 + $0xb0] sm:$0xff] }
 0xcdf   : > { %v5767_v40 = vpop.f32.mrb[40].mxu1  ;;  %v5938_v33 = vpack.c.bf16 %v5196_v32, %v5195_v31 }
 0xce0   : > { %v4398_v43 = vpop.f32.mrb[41].mxu1 }
 0xce1   : > { %5785 = vmatprep.mubr.msk.f32.mxu1 %vm1308_vm2, %v4398_v43 }
 0xce2   : > { %5786 = vmatmul.mubr.msk.f32.vlgmr.msra.gmra.mrb[44].mxu1 %vm1308_vm2, %v5767_v40 }
 0xce3   : > { %5933 = vmatpush3.bf16.msra.mxu1 %v5930_v27  ;;  %v5005_v27 = vrot.slane %v6739_v5, %v2668_v46 }
 0xce4   : > { %5935 = vmatprep.subr.bf16.mxu1 %v5934_v29 }
 0xce7   : > { %5937 = vmatpush3.bf16.msra.mxu1 %v5934_v29 }
 0xce8   : > { %5939 = vmatprep.subr.bf16.mxu1 %v5938_v33 }
 0xceb   : > { %5941 = vmatpush3.bf16.msra.mxu1 %v5938_v33 }
 0xda2   : > { %v5777_v44 = vpop.f32.mrb[42].mxu1 }
 0xda3   : > { %v4565_v48 = vpop.f32.mrb[43].mxu1  ;;  %v4744_v50 = vsel %vm279_vm1, %v5777_v44, 0.0 }
 0xda4   : > { %v4737_v56 = vsel %vm279_vm1, %v4565_v48, 0.0 }
 0xda9   : > { %v5772_v49 = vpop.f32.mrb[50].mxu0 }
 0xdaa   : > { %v4743_v51 = vsel %vm279_vm1, %v5772_v49, 0.0  ;;  %v4484_v53 = vpop.f32.mrb[51].mxu0 }
 0xdab   : > { %v4745_v61 = vadd.f32 %v4744_v50, %v4743_v51  ;;  %v4736_v62 = vsel %vm279_vm1, %v4484_v53, 0.0  ;;  %v4787_v51 = vrot.slane %v6739_v5, %v2449_v34  ;;  %v5197_v34 = vld [vmem:[%s6872_s5 + $0xb8] sm:$0xff] }
 0xdac   : > { %v4738_v30 = vadd.f32 %v4737_v56, %v4736_v62 }
 0xdb1   : > { %v5782_v52 = vpop.f32.mrb[52].mxu0 }
 0xdb2   : > { %v4746_v63 = vsel %vm279_vm1, %v5782_v52, 0.0  ;;  %v4646_v41 = vpop.f32.mrb[53].mxu0 }
 0xdb3   : > { %v4747_v8 = vadd.f32 %v4746_v63, %v4745_v61  ;;  %v4739_v0 = vsel %vm279_vm1, %v4646_v41, 0.0 }
 0xdb4   : > { %v4740_v2 = vadd.f32 %v4739_v0, %v4738_v30  ;;  %v4793_v30 = vrot.slane %v6739_v5, %v2455_v37  ;;  %v5198_v0 = vld [vmem:[%s6872_s5 + $0xc0] sm:$0xff]  ;;  %v4799_v37 = vrot.slane %v6739_v5, %v2461_v57 }
 0xdb5   : > { %v5787_v3 = vpop.f32.mrb[44].mxu1 }
 0xdb6   : > { %v4748_v11 = vsel %vm279_vm1, %v5787_v3, 0.0  ;;  %v4727_v12 = vpop.f32.mrb[45].mxu1 }
 0xdb7   : > { %v4749_v54 = vadd.f32 %v4748_v11, %v4747_v8  ;;  %v4741_v6 = vsel %vm279_vm1, %v4727_v12, 0.0 }
 0xdb8   : > { %v4742_v4 = vadd.f32 %v4741_v6, %v4740_v2  ;;  %v5942_v2 = vpack.c.bf16 %v5198_v0, %v5197_v34 }
 0xdb9   : > { %v4755_v9 = vadd.f32 %v4753_v7, %v4749_v54 }
 0xdba   : > { %v4754_v21 = vadd.f32 %v4753_v7, %v4742_v4  ;;  %5943 = vmatprep.subr.bf16.mxu1 %v5942_v2  ;;  %v4886_v4 = vrot.slane %v6739_v5, %v2548_v1 }
 0xdbb   : > { %v4757_v10 = vadd.f32 %v4755_v9, %v6571_v58  ;;  %5945 = vmatpush3.bf16.msra.mxu1 %v5942_v2 }
 0xdbc   : > { %v4756_v25 = vadd.f32 %v4754_v21, %v6573_v60  ;;  %v5187_v60 = vld [vmem:[%s6872_s5 + $0x68] sm:$0xff] }
 0xdbd   : > { %v4761_v13 = vsel %vm279_vm1, %v4757_v10, 0.0  ;;  %v5922_v19 = vpack.c.bf16 %v5188_v47, %v5187_v60 }
 0xdbe   : > { %4762 = vadd.xlane.f32.xlu1 %v4761_v13  ;;  %v4758_v14 = vsel %vm279_vm1, %v4756_v25, 0.0 }
 0xdbf   : > { %4759 = vadd.xlane.f32.xlu0 %v4758_v14  ;;  %5923 = vmatprep.subr.bf16.mxu0 %v5922_v19 }
 0xdc0   : > { %5925 = vmatpush3.bf16.msra.mxu0 %v5922_v19 }
 0xdc1   : > { %5927 = vmatprep.subr.bf16.mxu0 %v5926_v55 }
 0xdc4   : > { %5929 = vmatpush3.bf16.msra.mxu0 %v5926_v55 }
 0xe4b   : > { %v4763_v36 = vpop.xlane.xlu1 %4762 }
 0xe4c   : > { %v4765_v35 = vmul.f32 0.03125, %v4763_v36  ;;  %v4760_v15 = vpop.xlane.xlu0 %4759 }
 0xe4d   : > { %v4764_v16 = vmul.f32 0.03125, %v4760_v15 }
 0xe4e   : > { %v4767_v38 = vsub.f32 %v4757_v10, %v4765_v35 }
 0xe4f   : > { %v4766_v17 = vsub.f32 %v4756_v25, %v4764_v16 }
 0xe50   : > { %v4769_v39 = vmul.f32 %v4767_v38, %v4767_v38 }
 0xe51   : > { %v4768_v18 = vmul.f32 %v4766_v17, %v4766_v17 }
 0xe52   : > { %v4773_v42 = vsel %vm279_vm1, %v4769_v39, 0.0 }
 0xe53   : > { %4774 = vadd.xlane.f32.xlu1 %v4773_v42  ;;  %v4770_v58 = vsel %vm279_vm1, %v4768_v18, 0.0 }
 0xe54   : > { %4771 = vadd.xlane.f32.xlu0 %v4770_v58 }
 0xee0   : > { %v4775_v40 = vpop.xlane.xlu1 %4774 }
 0xee1   : > { %v4777_v43 = vmul.f32 0.03125, %v4775_v40  ;;  %v4772_v44 = vpop.xlane.xlu0 %4771 }
 0xee2   : > { %v4776_v48 = vmul.f32 0.03125, %v4772_v44 }
 0xee3   : > { %v4779_v49 = vadd.f32 1e-05, %v4777_v43 }
 0xee4   : > { %v4778_v50 = vadd.f32 1e-05, %v4776_v48 }
 0xee5   : > { %6060 = vrsqrt.f32 %v4779_v49 }
 0xee6   : > { %6062 = vrsqrt.f32 %v4778_v50 }
 0xeef   : > { %v6061_v53 = vpop.eup %6060 }
 0xef0   : > { %v6063_v56 = vpop.eup %6062  ;;  %v4783_v61 = vmul.f32 %v6061_v53, %v4767_v38 }
 0xef1   : > { %v4782_v62 = vmul.f32 %v6063_v56, %v4766_v17 }
 0xef2   : > { %v4789_v52 = vmul.f32 %v4787_v51, %v4783_v61 }
 0xef3   : > { %v4788_v63 = vmul.f32 %v4787_v51, %v4782_v62 }
 0xef4   : > { %v4795_v8 = vadd.f32 %v4793_v30, %v4789_v52 }
 0xef5   : > { %v4794_v41 = vadd.f32 %v4793_v30, %v4788_v63 }
 0xef7   : > { %5796 = vmatprep.mubr.msk.f32.mxu0 %vm279_vm1, %v4794_v41 }
 0xef8   : > { %5797 = vmatmul.mubr.msk.f32.vlgmr.msra.gmra.mrb[54].mxu0 %vm279_vm1, %v4795_v8 }
 0xfcb   : > { %v5798_v3 = vpop.f32.mrb[54].mxu0 }
 0xfcc   : > { %v4878_v7 = vadd.f32 %v5798_v3, %v4799_v37  ;;  %v4872_v11 = vpop.f32.mrb[55].mxu0 }
 0xfcd   : > { %v4873_v12 = vadd.f32 %v4872_v11, %v4799_v37 }
 0xfce   : > { %v4882_v6 = vmax.f32 %v4878_v7, 0.0 }
 0xfcf   : > { %v4881_v54 = vmax.f32 %v4873_v12, 0.0 }
 0xfd1   : > { %5815 = vmatprep.mubr.msk.f32.mxu1 %vm2550_vm8, %v4881_v54 }
 0xfd2   : > { %5816 = vmatmul.mubr.msk.f32.vlgmr.msra.gmra.mrb[46].mxu1 %vm2550_vm8, %v4882_v6 }
0x10a5   : > { %v5817_v9 = vpop.f32.mrb[46].mxu1 }
0x10a6   : > { %v4965_v21 = vadd.f32 %v5817_v9, %v4886_v4  ;;  %v4959_v10 = vpop.f32.mrb[47].mxu1 }
0x10a7   : > { %v4960_v25 = vadd.f32 %v4959_v10, %v4886_v4 }
0x10a8   : > { %v4969_v13 = vadd.f32 %v4965_v21, %v4795_v8 }
0x10a9   : > { %v4968_v57 = vadd.f32 %v4960_v25, %v4794_v41 }
0x10aa   : > { %v4973_v14 = vsel %vm279_vm1, %v4969_v13, 0.0 }
0x10ab   : > { %4974 = vadd.xlane.f32.xlu1 %v4973_v14  ;;  %v4970_v36 = vsel %vm279_vm1, %v4968_v57, 0.0 }
0x10ac   : > { %4971 = vadd.xlane.f32.xlu0 %v4970_v36 }
0x1138   : > { %v4975_v35 = vpop.xlane.xlu1 %4974 }
0x1139   : > { %v4977_v15 = vmul.f32 0.03125, %v4975_v35  ;;  %v4972_v16 = vpop.xlane.xlu0 %4971 }
0x113a   : > { %v4976_v38 = vmul.f32 0.03125, %v4972_v16 }
0x113b   : > { %v4979_v17 = vsub.f32 %v4969_v13, %v4977_v15 }
0x113c   : > { %v4978_v39 = vsub.f32 %v4968_v57, %v4976_v38 }
0x113d   : > { %v4981_v1 = vmul.f32 %v4979_v17, %v4979_v17 }
0x113e   : > { %v4980_v18 = vmul.f32 %v4978_v39, %v4978_v39 }
0x113f   : > { %v4985_v42 = vsel %vm279_vm1, %v4981_v1, 0.0 }
0x1140   : > { %4986 = vadd.xlane.f32.xlu1 %v4985_v42  ;;  %v4982_v58 = vsel %vm279_vm1, %v4980_v18, 0.0 }
0x1141   : > { %4983 = vadd.xlane.f32.xlu0 %v4982_v58 }
0x11cd   : > { %v4987_v60 = vpop.xlane.xlu1 %4986 }
0x11ce   : > { %v4989_v47 = vmul.f32 0.03125, %v4987_v60  ;;  %v4984_v19 = vpop.xlane.xlu0 %4983 }
0x11cf   : > { %v4988_v20 = vmul.f32 0.03125, %v4984_v19 }
0x11d0   : > { %v4991_v22 = vadd.f32 1e-05, %v4989_v47 }
0x11d1   : > { %v4990_v55 = vadd.f32 1e-05, %v4988_v20 }
0x11d2   : > { %6064 = vrsqrt.f32 %v4991_v22 }
0x11d3   : > { %6066 = vrsqrt.f32 %v4990_v55 }
0x11dc   : > { %v6065_v24 = vpop.eup %6064 }
0x11dd   : > { %v6067_v26 = vpop.eup %6066  ;;  %v4995_v28 = vmul.f32 %v6065_v24, %v4979_v17 }
0x11de   : > { %v4994_v29 = vmul.f32 %v6067_v26, %v4978_v39 }
0x11df   : > { %v5001_v31 = vmul.f32 %v4999_v23, %v4995_v28 }
0x11e0   : > { %v5000_v32 = vmul.f32 %v4999_v23, %v4994_v29 }
0x11e1   : > { %v5007_v33 = vadd.f32 %v5005_v27, %v5001_v31 }
0x11e2   : > { %v5006_v59 = vadd.f32 %v5005_v27, %v5000_v32 }
0x11e3   : > { %5009 = vst.msk [vmem:[%s261_s17 + $0x8] sm:$0xff] %vm279_vm1, %v5007_v33 }
0x11e4   : > { %5008 = vst.msk [vmem:[%s261_s17] sm:$0xff] %vm279_vm1, %v5006_v59 }
0x11e5   : > { %6081 = shalt.err (!%p6078_p3)
}
0x11e6   : > { %s6082_s11 = scalar_lea.hbm %s6820_s26, 256  ;;  %s6086_s14 = scalar_lea.hbm %s6873_s6, 512 }
0x11e7   : > { %p6083_p4 = scmp.ne.s32.totalorder %s6820_s26, %s6082_s11  ;;  %p6087_p9 = scmp.lt.u32.totalorder %s6820_s26, %s6873_s6 }
0x11e8   : > { %p6088_p10 = scmp.lt.u32.totalorder %s6086_s14, %s6082_s11  ;;  %p6090_p12 = scmp.lt.u32.totalorder %s6082_s11, %s6820_s26 }
0x11e9   : > { %p6084_p7 = pnand %p6083_p4, %p6209_p5 }
0x11ea   : > { %p6089_p11 = por %p6088_p10, %p6087_p9 }
0x11eb   : > { %p6085_p8 = pneg %p6084_p7 }
0x11ec   : > { %p6091_p13 = por %p6090_p12, %p6089_p11 }
0x11ee   : > { %p6092_p0 = pnand %p6091_p13, %p6085_p8 }
0x11f0   : > { %6095 = shalt.err (!%p6092_p0)
}
0x11f1   : > { %s6134_s17 = smov 128   ;;  %s6135_s19 = smov 8  }
0x11f2   : > { %5946 = dma.vmem_to_hbm [thread:$0]  (%p6209_p5), %s6822_s18, 256, %s6820_s26, %s6826_s25, %s6134_s17, %s6134_s17, %s6135_s19  }
0x11f3 PF: > { %p5952_p1 = scmp.ge.s32.totalorder %s6130_s24, 2  ;;  %s5039_s20 = sand.u32 1, %s6118_s21  }
0x11f4   : > { %s5040_s28 = scalar_lea.sflag [#allocation3], %s5039_s20 }
0x11f5   : > { %p5949_p2 = pnand %p5952_p1, %p6213_p6 }
0x11f7   : > { %6113 = dma.done.wait (!%p5949_p2), %s5040_s28, 256  }
0x11f8   : > { %6115 = vsyncadd (!%p5949_p2), %s5040_s28, 4294967040  ;;  %p16_p3 = scmp.ge.s32.totalorder %s6196_s27, 4   ;;  %s6878_s21 = smov %s6122_s22 }
0x11f9   : > { %s6879_s22 = smov %s6126_s23  ;;  %s6880_s23 = smov %s6207_s30 }
0x11fa   : > { %s6881_s24 = smov %s6196_s27  ;;  %18 = sbr.rel (!%p16_p3) target bundleno = 3 (0x3), region = 89 }
0x1201   :  { %5045 = vsyncpa [#allocation3], 1 }
0x1202   :  { %5047 = vsyncpa [#allocation3 + $0x1], 1 }

</bundles_post_ra>
